<compile_context>
chip_gen: v7x
topology: tpu7x:2x2x1
jax: 0.10.0
libtpu: 0.0.40
codegen_flags: <defaults>
</compile_context>

<pallas_src>
import functools

import jax
import jax.numpy as jnp
from jax.experimental import pallas as pl
from jax.experimental.pallas import tpu as pltpu

_EPS = 1e-5


def _resblock_kernel(x_ref, m_ref, w1_ref, g1_ref, be1_ref,
                     w2_ref, g2_ref, be2_ref, o_ref, s_ref, a_ref, *, W):
    # x_ref : (C, NP)   activations, NP = N*H*W on the lane axis
    # m_ref : (9, NP)   f32 per-tap validity masks (row & column)
    # w*_ref: (C, 9*C)  flattened conv weights, row k = (kh*3 + kw)*C + c_in
    # g*/be*: (C, 1)    BN gamma / beta
    # s_ref : (9*C, NP) f32 im2col slab (scratch)
    # a_ref : (C, NP)   f32 activation scratch
    C, NP = x_ref.shape
    taps = [(kh * 3 + kw, (kh - 1) * W + (kw - 1))
            for kh in range(3) for kw in range(3)]

    # ---- zero the out-of-range strips of the slab ONCE (shared by both convs)
    for t, d in taps:
        if d > 0:
            s_ref[t * C:(t + 1) * C, NP - d:NP] = jnp.zeros((C, d), jnp.float32)
        elif d < 0:
            s_ref[t * C:(t + 1) * C, 0:-d] = jnp.zeros((C, -d), jnp.float32)

    def build_slab(src_ref):
        # Each tap = one edge-masked, statically-offset window store into rows
        # [t*C, (t+1)*C) of the slab.  Masks zero both out-of-column positions
        # and positions whose source row falls outside / in a different image.
        for t, d in taps:
            src0, dst0 = max(0, d), max(0, -d)
            ln = NP - abs(d)
            win = src_ref[:, src0:src0 + ln].astype(jnp.float32)
            if d != 0:
                win = win * m_ref[t:t + 1, dst0:dst0 + ln]
            s_ref[t * C:(t + 1) * C, dst0:dst0 + ln] = win

    def conv(w_ref):
        # Single batch-fused matmul: (C, 9C) @ (9C, N*H*W)
        return jnp.dot(w_ref[...].astype(jnp.float32), s_ref[...],
                       preferred_element_type=jnp.float32)

    def bn_scale_shift(y, g_ref, be_ref):
        # train-mode BN: one-pass biased batch statistics over N*H*W per channel
        inv_cnt = 1.0 / float(NP)
        s1 = jnp.sum(y, axis=1, keepdims=True) * inv_cnt          # (C, 1)
        s2 = jnp.sum(y * y, axis=1, keepdims=True) * inv_cnt
        var = jnp.maximum(s2 - s1 * s1, 0.0)                      # clamp f32 cancellation
        scale = g_ref[...] * jax.lax.rsqrt(var + _EPS)
        shift = be_ref[...] - s1 * scale
        return scale, shift

    # ---- conv1 -> BN1 -> ReLU ----
    build_slab(x_ref)
    h = conv(w1_ref)
    scale, shift = bn_scale_shift(h, g1_ref, be1_ref)
    a_ref[...] = jnp.maximum(h * scale + shift, 0.0)

    # ---- conv2 -> BN2 ----
    build_slab(a_ref)
    h = conv(w2_ref)
    scale, shift = bn_scale_shift(h, g2_ref, be2_ref)

    # ---- residual + ReLU ----
    x = x_ref[...].astype(jnp.float32)
    o_ref[...] = jnp.maximum(h * scale + shift + x, 0.0).astype(o_ref.dtype)


def residual_conv_block(x_nchw, w1, b1, g1, be1, w2, b2, g2, be2):
    """x_nchw: (N, C, H, W); conv weights in PyTorch OIHW (C, C, 3, 3).

    b1 / b2 are accepted for API parity but unused: a conv bias added before
    train-mode BatchNorm is exactly cancelled by the mean subtraction.
    (Not valid for eval-mode BN with running statistics.)
    """
    del b1, b2
    N, C, H, W = x_nchw.shape
    P = H * W
    NP = N * P

    # (N,C,H,W) -> (C, N*H*W): channels on sublanes, batch*spatial lane-dense.
    x_cn = jnp.transpose(x_nchw, (1, 0, 2, 3)).reshape(C, NP)
    w1f = jnp.transpose(w1, (0, 2, 3, 1)).reshape(C, 9 * C)   # (O,kh,kw,I) flat
    w2f = jnp.transpose(w2, (0, 2, 3, 1)).reshape(C, 9 * C)
    g1r, be1r = g1.reshape(C, 1), be1.reshape(C, 1)
    g2r, be2r = g2.reshape(C, 1), be2.reshape(C, 1)

    # Per-tap validity masks over the flat N*H*W axis (row & column validity).
    p = jnp.arange(NP, dtype=jnp.int32) % P
    hh, ww = p // W, p % W
    masks = []
    for kh in range(3):
        for kw in range(3):
            vh = jnp.logical_and(hh + (kh - 1) >= 0, hh + (kh - 1) <= H - 1)
            vw = jnp.logical_and(ww + (kw - 1) >= 0, ww + (kw - 1) <= W - 1)
            masks.append(jnp.logical_and(vh, vw))
    masks = jnp.stack(masks).astype(jnp.float32)               # (9, N*P)

    vmem = pl.BlockSpec(memory_space=pltpu.MemorySpace.VMEM)
    out = pl.pallas_call(
        functools.partial(_resblock_kernel, W=W),
        out_shape=jax.ShapeDtypeStruct((C, NP), x_nchw.dtype),
        in_specs=[vmem] * 8,
        out_specs=vmem,
        scratch_shapes=[pltpu.VMEM((9 * C, NP), jnp.float32),   # im2col slab
                        pltpu.VMEM((C, NP), jnp.float32)],      # activations
    )(x_cn, masks, w1f, g1r, be1r, w2f, g2r, be2r)
    return jnp.transpose(out.reshape(C, N, H, W), (1, 0, 2, 3))


def _reference(x, w1, b1, g1, be1, w2, b2, g2, be2):
    """Pure-JAX (XLA) reference matching the PyTorch forward in train mode."""
    def conv(x, w, b):
        y = jax.lax.conv_general_dilated(
            x, w, window_strides=(1, 1), padding="SAME",
            dimension_numbers=("NCHW", "OIHW", "NCHW"))
        return y + b.reshape(1, -1, 1, 1)

    def bn(y, g, be):
        mean = jnp.mean(y, axis=(0, 2, 3), keepdims=True)
        var = jnp.mean((y - mean) ** 2, axis=(0, 2, 3), keepdims=True)
        return (y - mean) * jax.lax.rsqrt(var + _EPS) * g.reshape(1, -1, 1, 1) \
               + be.reshape(1, -1, 1, 1)

    h = conv(x, w1, b1)
    h = jnp.maximum(bn(h, g1, be1), 0.0)
    h = conv(h, w2, b2)
    h = bn(h, g2, be2)
    return jnp.maximum(h + x, 0.0)


if __name__ == "__main__":
    key = jax.random.PRNGKey(0)
    N, C, H, W = 2, 4, 16, 16
    ks = jax.random.split(key, 9)

    x = jax.random.normal(ks[0], (N, C, H, W), jnp.float32)
    w1 = 0.1 * jax.random.normal(ks[1], (C, C, 3, 3), jnp.float32)
    b1 = 0.1 * jax.random.normal(ks[2], (C,), jnp.float32)
    g1 = 1.0 + 0.1 * jax.random.normal(ks[3], (C,), jnp.float32)
    be1 = 0.1 * jax.random.normal(ks[4], (C,), jnp.float32)
    w2 = 0.1 * jax.random.normal(ks[5], (C, C, 3, 3), jnp.float32)
    b2 = 0.1 * jax.random.normal(ks[6], (C,), jnp.float32)
    g2 = 1.0 + 0.1 * jax.random.normal(ks[7], (C,), jnp.float32)
    be2 = 0.1 * jax.random.normal(ks[8], (C,), jnp.float32)

    out = residual_conv_block(x, w1, b1, g1, be1, w2, b2, g2, be2)
    out = jax.block_until_ready(out)

    ref = _reference(x, w1, b1, g1, be1, w2, b2, g2, be2)
    assert out.shape == (N, C, H, W)
    assert jnp.allclose(out, ref, atol=1e-3, rtol=1e-3), \
        f"max abs err {float(jnp.max(jnp.abs(out - ref)))}"

    print("KERNEL_OK")
</pallas_src>

<mosaic_0001>
module attributes {stable_mosaic.version = 11 : i64} {
  func.func @_resblock_kernel(%arg0: memref<4x512xf32, #tpu.memory_space<vmem>>, %arg1: memref<9x512xf32, #tpu.memory_space<vmem>>, %arg2: memref<4x36xf32, #tpu.memory_space<vmem>>, %arg3: memref<4x1xf32, #tpu.memory_space<vmem>>, %arg4: memref<4x1xf32, #tpu.memory_space<vmem>>, %arg5: memref<4x36xf32, #tpu.memory_space<vmem>>, %arg6: memref<4x1xf32, #tpu.memory_space<vmem>>, %arg7: memref<4x1xf32, #tpu.memory_space<vmem>>, %arg8: memref<4x512xf32, #tpu.memory_space<vmem>>, %arg9: memref<36x512xf32, #tpu.memory_space<vmem>>, %arg10: memref<4x512xf32, #tpu.memory_space<vmem>>) attributes {dimension_semantics = [], scalar_prefetch = 0 : i64, scratch_operands = 2 : i64, tpu.core_type = #tpu.core_type<tc>} {
    %cst = arith.constant 0.000000e+00 : f32
    %0 = vector.broadcast %cst : f32 to vector<4x17xf32>
    %c0 = arith.constant 0 : index
    %c0_0 = arith.constant 0 : index
    %1 = vector.load %arg9[%c0, %c0_0] : memref<36x512xf32, #tpu.memory_space<vmem>>, vector<4x17xf32>
    tpu.vector_store %arg9[%c0, %c0_0], %0 {strides = array<i32>} : memref<36x512xf32, #tpu.memory_space<vmem>>, vector<4x17xf32>,
    %cst_1 = arith.constant 0.000000e+00 : f32
    %2 = vector.broadcast %cst_1 : f32 to vector<4x16xf32>
    %c4 = arith.constant 4 : index
    %c0_2 = arith.constant 0 : index
    %3 = vector.load %arg9[%c4, %c0_2] : memref<36x512xf32, #tpu.memory_space<vmem>>, vector<4x16xf32>
    tpu.vector_store %arg9[%c4, %c0_2], %2 {strides = array<i32>} : memref<36x512xf32, #tpu.memory_space<vmem>>, vector<4x16xf32>,
    %cst_3 = arith.constant 0.000000e+00 : f32
    %4 = vector.broadcast %cst_3 : f32 to vector<4x15xf32>
    %c8 = arith.constant 8 : index
    %c0_4 = arith.constant 0 : index
    %5 = vector.load %arg9[%c8, %c0_4] : memref<36x512xf32, #tpu.memory_space<vmem>>, vector<4x15xf32>
    tpu.vector_store %arg9[%c8, %c0_4], %4 {strides = array<i32>} : memref<36x512xf32, #tpu.memory_space<vmem>>, vector<4x15xf32>,
    %cst_5 = arith.constant 0.000000e+00 : f32
    %6 = vector.broadcast %cst_5 : f32 to vector<4x1xf32>
    %c12 = arith.constant 12 : index
    %c0_6 = arith.constant 0 : index
    %7 = vector.load %arg9[%c12, %c0_6] : memref<36x512xf32, #tpu.memory_space<vmem>>, vector<4x1xf32>
    tpu.vector_store %arg9[%c12, %c0_6], %6 {strides = array<i32>} : memref<36x512xf32, #tpu.memory_space<vmem>>, vector<4x1xf32>,
    %cst_7 = arith.constant 0.000000e+00 : f32
    %8 = vector.broadcast %cst_7 : f32 to vector<4x1xf32>
    %c20 = arith.constant 20 : index
    %c511 = arith.constant 511 : index
    %9 = vector.load %arg9[%c20, %c511] : memref<36x512xf32, #tpu.memory_space<vmem>>, vector<4x1xf32>
    tpu.vector_store %arg9[%c20, %c511], %8 {strides = array<i32>} : memref<36x512xf32, #tpu.memory_space<vmem>>, vector<4x1xf32>,
    %cst_8 = arith.constant 0.000000e+00 : f32
    %10 = vector.broadcast %cst_8 : f32 to vector<4x15xf32>
    %c24 = arith.constant 24 : index
    %c497 = arith.constant 497 : index
    %11 = vector.load %arg9[%c24, %c497] : memref<36x512xf32, #tpu.memory_space<vmem>>, vector<4x15xf32>
    tpu.vector_store %arg9[%c24, %c497], %10 {strides = array<i32>} : memref<36x512xf32, #tpu.memory_space<vmem>>, vector<4x15xf32>,
    %cst_9 = arith.constant 0.000000e+00 : f32
    %12 = vector.broadcast %cst_9 : f32 to vector<4x16xf32>
    %c28 = arith.constant 28 : index
    %c496 = arith.constant 496 : index
    %13 = vector.load %arg9[%c28, %c496] : memref<36x512xf32, #tpu.memory_space<vmem>>, vector<4x16xf32>
    tpu.vector_store %arg9[%c28, %c496], %12 {strides = array<i32>} : memref<36x512xf32, #tpu.memory_space<vmem>>, vector<4x16xf32>,
    %cst_10 = arith.constant 0.000000e+00 : f32
    %14 = vector.broadcast %cst_10 : f32 to vector<4x17xf32>
    %c32 = arith.constant 32 : index
    %c495 = arith.constant 495 : index
    %15 = vector.load %arg9[%c32, %c495] : memref<36x512xf32, #tpu.memory_space<vmem>>, vector<4x17xf32>
    tpu.vector_store %arg9[%c32, %c495], %14 {strides = array<i32>} : memref<36x512xf32, #tpu.memory_space<vmem>>, vector<4x17xf32>,
    %c0_11 = arith.constant 0 : index
    %c0_12 = arith.constant 0 : index
    %16 = vector.load %arg0[%c0_11, %c0_12] : memref<4x512xf32, #tpu.memory_space<vmem>>, vector<4x495xf32>
    %c0_13 = arith.constant 0 : index
    %c17 = arith.constant 17 : index
    %17 = vector.load %arg1[%c0_13, %c17] : memref<9x512xf32, #tpu.memory_space<vmem>>, vector<1x495xf32>
    %18 = vector.broadcast %17 : vector<1x495xf32> to vector<4x495xf32>
    %19 = arith.mulf %16, %18 : vector<4x495xf32>
    %c0_14 = arith.constant 0 : index
    %c17_15 = arith.constant 17 : index
    %20 = vector.load %arg9[%c0_14, %c17_15] : memref<36x512xf32, #tpu.memory_space<vmem>>, vector<4x495xf32>
    tpu.vector_store %arg9[%c0_14, %c17_15], %19 {strides = array<i32>} : memref<36x512xf32, #tpu.memory_space<vmem>>, vector<4x495xf32>,
    %c0_16 = arith.constant 0 : index
    %c0_17 = arith.constant 0 : index
    %21 = vector.load %arg0[%c0_16, %c0_17] : memref<4x512xf32, #tpu.memory_space<vmem>>, vector<4x496xf32>
    %c1 = arith.constant 1 : index
    %c16 = arith.constant 16 : index
    %22 = vector.load %arg1[%c1, %c16] : memref<9x512xf32, #tpu.memory_space<vmem>>, vector<1x496xf32>
    %23 = vector.broadcast %22 : vector<1x496xf32> to vector<4x496xf32>
    %24 = arith.mulf %21, %23 : vector<4x496xf32>
    %c4_18 = arith.constant 4 : index
    %c16_19 = arith.constant 16 : index
    %25 = vector.load %arg9[%c4_18, %c16_19] : memref<36x512xf32, #tpu.memory_space<vmem>>, vector<4x496xf32>
    tpu.vector_store %arg9[%c4_18, %c16_19], %24 {strides = array<i32>} : memref<36x512xf32, #tpu.memory_space<vmem>>, vector<4x496xf32>,
    %c0_20 = arith.constant 0 : index
    %c0_21 = arith.constant 0 : index
    %26 = vector.load %arg0[%c0_20, %c0_21] : memref<4x512xf32, #tpu.memory_space<vmem>>, vector<4x497xf32>
    %c2 = arith.constant 2 : index
    %c15 = arith.constant 15 : index
    %27 = vector.load %arg1[%c2, %c15] : memref<9x512xf32, #tpu.memory_space<vmem>>, vector<1x497xf32>
    %28 = vector.broadcast %27 : vector<1x497xf32> to vector<4x497xf32>
    %29 = arith.mulf %26, %28 : vector<4x497xf32>
    %c8_22 = arith.constant 8 : index
    %c15_23 = arith.constant 15 : index
    %30 = vector.load %arg9[%c8_22, %c15_23] : memref<36x512xf32, #tpu.memory_space<vmem>>, vector<4x497xf32>
    tpu.vector_store %arg9[%c8_22, %c15_23], %29 {strides = array<i32>} : memref<36x512xf32, #tpu.memory_space<vmem>>, vector<4x497xf32>,
    %c0_24 = arith.constant 0 : index
    %c0_25 = arith.constant 0 : index
    %31 = vector.load %arg0[%c0_24, %c0_25] : memref<4x512xf32, #tpu.memory_space<vmem>>, vector<4x511xf32>
    %c3 = arith.constant 3 : index
    %c1_26 = arith.constant 1 : index
    %32 = vector.load %arg1[%c3, %c1_26] : memref<9x512xf32, #tpu.memory_space<vmem>>, vector<1x511xf32>
    %33 = vector.broadcast %32 : vector<1x511xf32> to vector<4x511xf32>
    %34 = arith.mulf %31, %33 : vector<4x511xf32>
    %c12_27 = arith.constant 12 : index
    %c1_28 = arith.constant 1 : index
    %35 = vector.load %arg9[%c12_27, %c1_28] : memref<36x512xf32, #tpu.memory_space<vmem>>, vector<4x511xf32>
    tpu.vector_store %arg9[%c12_27, %c1_28], %34 {strides = array<i32>} : memref<36x512xf32, #tpu.memory_space<vmem>>, vector<4x511xf32>,
    %c0_29 = arith.constant 0 : index
    %c0_30 = arith.constant 0 : index
    %36 = vector.load %arg0[%c0_29, %c0_30] : memref<4x512xf32, #tpu.memory_space<vmem>>, vector<4x512xf32>
    %c16_31 = arith.constant 16 : index
    %c0_32 = arith.constant 0 : index
    %37 = vector.load %arg9[%c16_31, %c0_32] : memref<36x512xf32, #tpu.memory_space<vmem>>, vector<4x512xf32>
    tpu.vector_store %arg9[%c16_31, %c0_32], %36 {strides = array<i32>} : memref<36x512xf32, #tpu.memory_space<vmem>>, vector<4x512xf32>,
    %c0_33 = arith.constant 0 : index
    %c1_34 = arith.constant 1 : index
    %38 = vector.load %arg0[%c0_33, %c1_34] : memref<4x512xf32, #tpu.memory_space<vmem>>, vector<4x511xf32>
    %c5 = arith.constant 5 : index
    %c0_35 = arith.constant 0 : index
    %39 = vector.load %arg1[%c5, %c0_35] : memref<9x512xf32, #tpu.memory_space<vmem>>, vector<1x511xf32>
    %40 = vector.broadcast %39 : vector<1x511xf32> to vector<4x511xf32>
    %41 = arith.mulf %38, %40 : vector<4x511xf32>
    %c20_36 = arith.constant 20 : index
    %c0_37 = arith.constant 0 : index
    %42 = vector.load %arg9[%c20_36, %c0_37] : memref<36x512xf32, #tpu.memory_space<vmem>>, vector<4x511xf32>
    tpu.vector_store %arg9[%c20_36, %c0_37], %41 {strides = array<i32>} : memref<36x512xf32, #tpu.memory_space<vmem>>, vector<4x511xf32>,
    %c0_38 = arith.constant 0 : index
    %c15_39 = arith.constant 15 : index
    %43 = vector.load %arg0[%c0_38, %c15_39] : memref<4x512xf32, #tpu.memory_space<vmem>>, vector<4x497xf32>
    %c6 = arith.constant 6 : index
    %c0_40 = arith.constant 0 : index
    %44 = vector.load %arg1[%c6, %c0_40] : memref<9x512xf32, #tpu.memory_space<vmem>>, vector<1x497xf32>
    %45 = vector.broadcast %44 : vector<1x497xf32> to vector<4x497xf32>
    %46 = arith.mulf %43, %45 : vector<4x497xf32>
    %c24_41 = arith.constant 24 : index
    %c0_42 = arith.constant 0 : index
    %47 = vector.load %arg9[%c24_41, %c0_42] : memref<36x512xf32, #tpu.memory_space<vmem>>, vector<4x497xf32>
    tpu.vector_store %arg9[%c24_41, %c0_42], %46 {strides = array<i32>} : memref<36x512xf32, #tpu.memory_space<vmem>>, vector<4x497xf32>,
    %c0_43 = arith.constant 0 : index
    %c16_44 = arith.constant 16 : index
    %48 = vector.load %arg0[%c0_43, %c16_44] : memref<4x512xf32, #tpu.memory_space<vmem>>, vector<4x496xf32>
    %c7 = arith.constant 7 : index
    %c0_45 = arith.constant 0 : index
    %49 = vector.load %arg1[%c7, %c0_45] : memref<9x512xf32, #tpu.memory_space<vmem>>, vector<1x496xf32>
    %50 = vector.broadcast %49 : vector<1x496xf32> to vector<4x496xf32>
    %51 = arith.mulf %48, %50 : vector<4x496xf32>
    %c28_46 = arith.constant 28 : index
    %c0_47 = arith.constant 0 : index
    %52 = vector.load %arg9[%c28_46, %c0_47] : memref<36x512xf32, #tpu.memory_space<vmem>>, vector<4x496xf32>
    tpu.vector_store %arg9[%c28_46, %c0_47], %51 {strides = array<i32>} : memref<36x512xf32, #tpu.memory_space<vmem>>, vector<4x496xf32>,
    %c0_48 = arith.constant 0 : index
    %c17_49 = arith.constant 17 : index
    %53 = vector.load %arg0[%c0_48, %c17_49] : memref<4x512xf32, #tpu.memory_space<vmem>>, vector<4x495xf32>
    %c8_50 = arith.constant 8 : index
    %c0_51 = arith.constant 0 : index
    %54 = vector.load %arg1[%c8_50, %c0_51] : memref<9x512xf32, #tpu.memory_space<vmem>>, vector<1x495xf32>
    %55 = vector.broadcast %54 : vector<1x495xf32> to vector<4x495xf32>
    %56 = arith.mulf %53, %55 : vector<4x495xf32>
    %c32_52 = arith.constant 32 : index
    %c0_53 = arith.constant 0 : index
    %57 = vector.load %arg9[%c32_52, %c0_53] : memref<36x512xf32, #tpu.memory_space<vmem>>, vector<4x495xf32>
    tpu.vector_store %arg9[%c32_52, %c0_53], %56 {strides = array<i32>} : memref<36x512xf32, #tpu.memory_space<vmem>>, vector<4x495xf32>,
    %c0_54 = arith.constant 0 : index
    %c0_55 = arith.constant 0 : index
    %58 = vector.load %arg2[%c0_54, %c0_55] : memref<4x36xf32, #tpu.memory_space<vmem>>, vector<4x36xf32>
    %c0_56 = arith.constant 0 : index
    %c0_57 = arith.constant 0 : index
    %59 = vector.load %arg9[%c0_56, %c0_57] : memref<36x512xf32, #tpu.memory_space<vmem>>, vector<36x512xf32>
    %cst_58 = arith.constant dense<0.000000e+00> : vector<4x512xf32>
    %60 = tpu.matmul %58, %59, %cst_58 {dimension_numbers = #tpu.dot_dimension_numbers<[1], [0], [0], [1], [0, 0, 1, 1], [], []>} : vector<4x36xf32>, vector<36x512xf32>, vector<4x512xf32> -> vector<4x512xf32>
    %cst_59 = arith.constant dense<0.000000e+00> : vector<4xf32>
    %61 = vector.multi_reduction <add>, %60, %cst_59 [1] : vector<4x512xf32> to vector<4xf32>
    %62 = vector.shape_cast %61 : vector<4xf32> to vector<4x1xf32>
    %cst_60 = arith.constant 0.001953125 : f32
    %63 = vector.broadcast %cst_60 : f32 to vector<4x1xf32>
    %64 = arith.mulf %62, %63 : vector<4x1xf32>
    %65 = arith.mulf %60, %60 : vector<4x512xf32>
    %cst_61 = arith.constant dense<0.000000e+00> : vector<4xf32>
    %66 = vector.multi_reduction <add>, %65, %cst_61 [1] : vector<4x512xf32> to vector<4xf32>
    %67 = vector.shape_cast %66 : vector<4xf32> to vector<4x1xf32>
    %cst_62 = arith.constant 0.001953125 : f32
    %68 = vector.broadcast %cst_62 : f32 to vector<4x1xf32>
    %69 = arith.mulf %67, %68 : vector<4x1xf32>
    %70 = arith.mulf %64, %64 : vector<4x1xf32>
    %71 = arith.subf %69, %70 : vector<4x1xf32>
    %cst_63 = arith.constant 0.000000e+00 : f32
    %72 = vector.broadcast %cst_63 : f32 to vector<4x1xf32>
    %73 = arith.maximumf %71, %72 : vector<4x1xf32>
    %c0_64 = arith.constant 0 : index
    %c0_65 = arith.constant 0 : index
    %74 = vector.load %arg3[%c0_64, %c0_65] : memref<4x1xf32, #tpu.memory_space<vmem>>, vector<4x1xf32>
    %cst_66 = arith.constant 9.99999974E-6 : f32
    %75 = vector.broadcast %cst_66 : f32 to vector<4x1xf32>
    %76 = arith.addf %73, %75 : vector<4x1xf32>
    %77 = math.rsqrt %76 : vector<4x1xf32>
    %78 = arith.mulf %74, %77 : vector<4x1xf32>
    %c0_67 = arith.constant 0 : index
    %c0_68 = arith.constant 0 : index
    %79 = vector.load %arg4[%c0_67, %c0_68] : memref<4x1xf32, #tpu.memory_space<vmem>>, vector<4x1xf32>
    %80 = arith.mulf %64, %78 : vector<4x1xf32>
    %81 = arith.subf %79, %80 : vector<4x1xf32>
    %82 = vector.broadcast %78 : vector<4x1xf32> to vector<4x512xf32>
    %83 = arith.mulf %60, %82 : vector<4x512xf32>
    %84 = vector.broadcast %81 : vector<4x1xf32> to vector<4x512xf32>
    %85 = arith.addf %83, %84 : vector<4x512xf32>
    %cst_69 = arith.constant 0.000000e+00 : f32
    %86 = vector.broadcast %cst_69 : f32 to vector<4x512xf32>
    %87 = arith.maximumf %85, %86 : vector<4x512xf32>
    %c0_70 = arith.constant 0 : index
    %c0_71 = arith.constant 0 : index
    %88 = vector.load %arg10[%c0_70, %c0_71] : memref<4x512xf32, #tpu.memory_space<vmem>>, vector<4x512xf32>
    tpu.vector_store %arg10[%c0_70, %c0_71], %87 {strides = array<i32>} : memref<4x512xf32, #tpu.memory_space<vmem>>, vector<4x512xf32>,
    %c0_72 = arith.constant 0 : index
    %c0_73 = arith.constant 0 : index
    %89 = vector.load %arg10[%c0_72, %c0_73] : memref<4x512xf32, #tpu.memory_space<vmem>>, vector<4x495xf32>
    %c0_74 = arith.constant 0 : index
    %c17_75 = arith.constant 17 : index
    %90 = vector.load %arg1[%c0_74, %c17_75] : memref<9x512xf32, #tpu.memory_space<vmem>>, vector<1x495xf32>
    %91 = vector.broadcast %90 : vector<1x495xf32> to vector<4x495xf32>
    %92 = arith.mulf %89, %91 : vector<4x495xf32>
    %c0_76 = arith.constant 0 : index
    %c17_77 = arith.constant 17 : index
    %93 = vector.load %arg9[%c0_76, %c17_77] : memref<36x512xf32, #tpu.memory_space<vmem>>, vector<4x495xf32>
    tpu.vector_store %arg9[%c0_76, %c17_77], %92 {strides = array<i32>} : memref<36x512xf32, #tpu.memory_space<vmem>>, vector<4x495xf32>,
    %c0_78 = arith.constant 0 : index
    %c0_79 = arith.constant 0 : index
    %94 = vector.load %arg10[%c0_78, %c0_79] : memref<4x512xf32, #tpu.memory_space<vmem>>, vector<4x496xf32>
    %c1_80 = arith.constant 1 : index
    %c16_81 = arith.constant 16 : index
    %95 = vector.load %arg1[%c1_80, %c16_81] : memref<9x512xf32, #tpu.memory_space<vmem>>, vector<1x496xf32>
    %96 = vector.broadcast %95 : vector<1x496xf32> to vector<4x496xf32>
    %97 = arith.mulf %94, %96 : vector<4x496xf32>
    %c4_82 = arith.constant 4 : index
    %c16_83 = arith.constant 16 : index
    %98 = vector.load %arg9[%c4_82, %c16_83] : memref<36x512xf32, #tpu.memory_space<vmem>>, vector<4x496xf32>
    tpu.vector_store %arg9[%c4_82, %c16_83], %97 {strides = array<i32>} : memref<36x512xf32, #tpu.memory_space<vmem>>, vector<4x496xf32>,
    %c0_84 = arith.constant 0 : index
    %c0_85 = arith.constant 0 : index
    %99 = vector.load %arg10[%c0_84, %c0_85] : memref<4x512xf32, #tpu.memory_space<vmem>>, vector<4x497xf32>
    %c2_86 = arith.constant 2 : index
    %c15_87 = arith.constant 15 : index
    %100 = vector.load %arg1[%c2_86, %c15_87] : memref<9x512xf32, #tpu.memory_space<vmem>>, vector<1x497xf32>
    %101 = vector.broadcast %100 : vector<1x497xf32> to vector<4x497xf32>
    %102 = arith.mulf %99, %101 : vector<4x497xf32>
    %c8_88 = arith.constant 8 : index
    %c15_89 = arith.constant 15 : index
    %103 = vector.load %arg9[%c8_88, %c15_89] : memref<36x512xf32, #tpu.memory_space<vmem>>, vector<4x497xf32>
    tpu.vector_store %arg9[%c8_88, %c15_89], %102 {strides = array<i32>} : memref<36x512xf32, #tpu.memory_space<vmem>>, vector<4x497xf32>,
    %c0_90 = arith.constant 0 : index
    %c0_91 = arith.constant 0 : index
    %104 = vector.load %arg10[%c0_90, %c0_91] : memref<4x512xf32, #tpu.memory_space<vmem>>, vector<4x511xf32>
    %c3_92 = arith.constant 3 : index
    %c1_93 = arith.constant 1 : index
    %105 = vector.load %arg1[%c3_92, %c1_93] : memref<9x512xf32, #tpu.memory_space<vmem>>, vector<1x511xf32>
    %106 = vector.broadcast %105 : vector<1x511xf32> to vector<4x511xf32>
    %107 = arith.mulf %104, %106 : vector<4x511xf32>
    %c12_94 = arith.constant 12 : index
    %c1_95 = arith.constant 1 : index
    %108 = vector.load %arg9[%c12_94, %c1_95] : memref<36x512xf32, #tpu.memory_space<vmem>>, vector<4x511xf32>
    tpu.vector_store %arg9[%c12_94, %c1_95], %107 {strides = array<i32>} : memref<36x512xf32, #tpu.memory_space<vmem>>, vector<4x511xf32>,
    %c0_96 = arith.constant 0 : index
    %c0_97 = arith.constant 0 : index
    %109 = vector.load %arg10[%c0_96, %c0_97] : memref<4x512xf32, #tpu.memory_space<vmem>>, vector<4x512xf32>
    %c16_98 = arith.constant 16 : index
    %c0_99 = arith.constant 0 : index
    %110 = vector.load %arg9[%c16_98, %c0_99] : memref<36x512xf32, #tpu.memory_space<vmem>>, vector<4x512xf32>
    tpu.vector_store %arg9[%c16_98, %c0_99], %109 {strides = array<i32>} : memref<36x512xf32, #tpu.memory_space<vmem>>, vector<4x512xf32>,
    %c0_100 = arith.constant 0 : index
    %c1_101 = arith.constant 1 : index
    %111 = vector.load %arg10[%c0_100, %c1_101] : memref<4x512xf32, #tpu.memory_space<vmem>>, vector<4x511xf32>
    %c5_102 = arith.constant 5 : index
    %c0_103 = arith.constant 0 : index
    %112 = vector.load %arg1[%c5_102, %c0_103] : memref<9x512xf32, #tpu.memory_space<vmem>>, vector<1x511xf32>
    %113 = vector.broadcast %112 : vector<1x511xf32> to vector<4x511xf32>
    %114 = arith.mulf %111, %113 : vector<4x511xf32>
    %c20_104 = arith.constant 20 : index
    %c0_105 = arith.constant 0 : index
    %115 = vector.load %arg9[%c20_104, %c0_105] : memref<36x512xf32, #tpu.memory_space<vmem>>, vector<4x511xf32>
    tpu.vector_store %arg9[%c20_104, %c0_105], %114 {strides = array<i32>} : memref<36x512xf32, #tpu.memory_space<vmem>>, vector<4x511xf32>,
    %c0_106 = arith.constant 0 : index
    %c15_107 = arith.constant 15 : index
    %116 = vector.load %arg10[%c0_106, %c15_107] : memref<4x512xf32, #tpu.memory_space<vmem>>, vector<4x497xf32>
    %c6_108 = arith.constant 6 : index
    %c0_109 = arith.constant 0 : index
    %117 = vector.load %arg1[%c6_108, %c0_109] : memref<9x512xf32, #tpu.memory_space<vmem>>, vector<1x497xf32>
    %118 = vector.broadcast %117 : vector<1x497xf32> to vector<4x497xf32>
    %119 = arith.mulf %116, %118 : vector<4x497xf32>
    %c24_110 = arith.constant 24 : index
    %c0_111 = arith.constant 0 : index
    %120 = vector.load %arg9[%c24_110, %c0_111] : memref<36x512xf32, #tpu.memory_space<vmem>>, vector<4x497xf32>
    tpu.vector_store %arg9[%c24_110, %c0_111], %119 {strides = array<i32>} : memref<36x512xf32, #tpu.memory_space<vmem>>, vector<4x497xf32>,
    %c0_112 = arith.constant 0 : index
    %c16_113 = arith.constant 16 : index
    %121 = vector.load %arg10[%c0_112, %c16_113] : memref<4x512xf32, #tpu.memory_space<vmem>>, vector<4x496xf32>
    %c7_114 = arith.constant 7 : index
    %c0_115 = arith.constant 0 : index
    %122 = vector.load %arg1[%c7_114, %c0_115] : memref<9x512xf32, #tpu.memory_space<vmem>>, vector<1x496xf32>
    %123 = vector.broadcast %122 : vector<1x496xf32> to vector<4x496xf32>
    %124 = arith.mulf %121, %123 : vector<4x496xf32>
    %c28_116 = arith.constant 28 : index
    %c0_117 = arith.constant 0 : index
    %125 = vector.load %arg9[%c28_116, %c0_117] : memref<36x512xf32, #tpu.memory_space<vmem>>, vector<4x496xf32>
    tpu.vector_store %arg9[%c28_116, %c0_117], %124 {strides = array<i32>} : memref<36x512xf32, #tpu.memory_space<vmem>>, vector<4x496xf32>,
    %c0_118 = arith.constant 0 : index
    %c17_119 = arith.constant 17 : index
    %126 = vector.load %arg10[%c0_118, %c17_119] : memref<4x512xf32, #tpu.memory_space<vmem>>, vector<4x495xf32>
    %c8_120 = arith.constant 8 : index
    %c0_121 = arith.constant 0 : index
    %127 = vector.load %arg1[%c8_120, %c0_121] : memref<9x512xf32, #tpu.memory_space<vmem>>, vector<1x495xf32>
    %128 = vector.broadcast %127 : vector<1x495xf32> to vector<4x495xf32>
    %129 = arith.mulf %126, %128 : vector<4x495xf32>
    %c32_122 = arith.constant 32 : index
    %c0_123 = arith.constant 0 : index
    %130 = vector.load %arg9[%c32_122, %c0_123] : memref<36x512xf32, #tpu.memory_space<vmem>>, vector<4x495xf32>
    tpu.vector_store %arg9[%c32_122, %c0_123], %129 {strides = array<i32>} : memref<36x512xf32, #tpu.memory_space<vmem>>, vector<4x495xf32>,
    %c0_124 = arith.constant 0 : index
    %c0_125 = arith.constant 0 : index
    %131 = vector.load %arg5[%c0_124, %c0_125] : memref<4x36xf32, #tpu.memory_space<vmem>>, vector<4x36xf32>
    %c0_126 = arith.constant 0 : index
    %c0_127 = arith.constant 0 : index
    %132 = vector.load %arg9[%c0_126, %c0_127] : memref<36x512xf32, #tpu.memory_space<vmem>>, vector<36x512xf32>
    %cst_128 = arith.constant dense<0.000000e+00> : vector<4x512xf32>
    %133 = tpu.matmul %131, %132, %cst_128 {dimension_numbers = #tpu.dot_dimension_numbers<[1], [0], [0], [1], [0, 0, 1, 1], [], []>} : vector<4x36xf32>, vector<36x512xf32>, vector<4x512xf32> -> vector<4x512xf32>
    %cst_129 = arith.constant dense<0.000000e+00> : vector<4xf32>
    %134 = vector.multi_reduction <add>, %133, %cst_129 [1] : vector<4x512xf32> to vector<4xf32>
    %135 = vector.shape_cast %134 : vector<4xf32> to vector<4x1xf32>
    %cst_130 = arith.constant 0.001953125 : f32
    %136 = vector.broadcast %cst_130 : f32 to vector<4x1xf32>
    %137 = arith.mulf %135, %136 : vector<4x1xf32>
    %138 = arith.mulf %133, %133 : vector<4x512xf32>
    %cst_131 = arith.constant dense<0.000000e+00> : vector<4xf32>
    %139 = vector.multi_reduction <add>, %138, %cst_131 [1] : vector<4x512xf32> to vector<4xf32>
    %140 = vector.shape_cast %139 : vector<4xf32> to vector<4x1xf32>
    %cst_132 = arith.constant 0.001953125 : f32
    %141 = vector.broadcast %cst_132 : f32 to vector<4x1xf32>
    %142 = arith.mulf %140, %141 : vector<4x1xf32>
    %143 = arith.mulf %137, %137 : vector<4x1xf32>
    %144 = arith.subf %142, %143 : vector<4x1xf32>
    %cst_133 = arith.constant 0.000000e+00 : f32
    %145 = vector.broadcast %cst_133 : f32 to vector<4x1xf32>
    %146 = arith.maximumf %144, %145 : vector<4x1xf32>
    %c0_134 = arith.constant 0 : index
    %c0_135 = arith.constant 0 : index
    %147 = vector.load %arg6[%c0_134, %c0_135] : memref<4x1xf32, #tpu.memory_space<vmem>>, vector<4x1xf32>
    %cst_136 = arith.constant 9.99999974E-6 : f32
    %148 = vector.broadcast %cst_136 : f32 to vector<4x1xf32>
    %149 = arith.addf %146, %148 : vector<4x1xf32>
    %150 = math.rsqrt %149 : vector<4x1xf32>
    %151 = arith.mulf %147, %150 : vector<4x1xf32>
    %c0_137 = arith.constant 0 : index
    %c0_138 = arith.constant 0 : index
    %152 = vector.load %arg7[%c0_137, %c0_138] : memref<4x1xf32, #tpu.memory_space<vmem>>, vector<4x1xf32>
    %153 = arith.mulf %137, %151 : vector<4x1xf32>
    %154 = arith.subf %152, %153 : vector<4x1xf32>
    %c0_139 = arith.constant 0 : index
    %c0_140 = arith.constant 0 : index
    %155 = vector.load %arg0[%c0_139, %c0_140] : memref<4x512xf32, #tpu.memory_space<vmem>>, vector<4x512xf32>
    %156 = vector.broadcast %151 : vector<4x1xf32> to vector<4x512xf32>
    %157 = arith.mulf %133, %156 : vector<4x512xf32>
    %158 = vector.broadcast %154 : vector<4x1xf32> to vector<4x512xf32>
    %159 = arith.addf %157, %158 : vector<4x512xf32>
    %160 = arith.addf %159, %155 : vector<4x512xf32>
    %cst_141 = arith.constant 0.000000e+00 : f32
    %161 = vector.broadcast %cst_141 : f32 to vector<4x512xf32>
    %162 = arith.maximumf %160, %161 : vector<4x512xf32>
    %c0_142 = arith.constant 0 : index
    %c0_143 = arith.constant 0 : index
    %163 = vector.load %arg8[%c0_142, %c0_143] : memref<4x512xf32, #tpu.memory_space<vmem>>, vector<4x512xf32>
    tpu.vector_store %arg8[%c0_142, %c0_143], %162 {strides = array<i32>} : memref<4x512xf32, #tpu.memory_space<vmem>>, vector<4x512xf32>,
    return
  }
}

</mosaic_0001>

<bundles_post_ra>
// kernel: tpu_custom_call.1
= control target key start
LH: loop header
LB: loop body
LE: loop exit
PB: predicated region body
PF: predicated region fallthrough
CT: control target
= control target key end

     0   :  { %13 = vsyncpa [#allocation5], 0  ;;  %s2237_s0 = inlined_call_operand.vmem [shape: f32[4,512], index: 0, kind: input, shape index: {}]   ;;  %s2238_s1 = inlined_call_operand.hbm [shape: f32[9,512], index: 1, kind: input, shape index: {}]   ;;  %s2239_s2 = inlined_call_operand.vmem [shape: f32[4,36], index: 2, kind: input, shape index: {}]   ;;  %s2240_s3 = inlined_call_operand.vmem [shape: f32[4,1], index: 3, kind: input, shape index: {}]   ;;  %s2241_s4 = inlined_call_operand.vmem [shape: f32[4,1], index: 4, kind: input, shape index: {}]   ;;  %s2242_s5 = inlined_call_operand.vmem [shape: f32[4,36], index: 5, kind: input, shape index: {}]   ;;  %s2243_s6 = inlined_call_operand.vmem [shape: f32[4,1], index: 6, kind: input, shape index: {}]   ;;  %s2244_s7 = inlined_call_operand.vmem [shape: f32[4,1], index: 7, kind: input, shape index: {}]   ;;  %s2245_s8 = inlined_call_operand.hbm [shape: f32[4,512], index: 8, kind: output, shape index: {}]  }
   0x1   :  { %14 = vsyncpa [#allocation6], 0  ;;  %s1668_s27 = smov [#allocation4]   ;;  %s1620_s9 = scalar_lea.hbm %s2238_s1, 1024 }
   0x2   :  { %s22_s28 = sshll.u32 %s1668_s27, 4  ;;  %p1621_p0 = scmp.ne.s32.totalorder %s2238_s1, %s1620_s9  ;;  %s23_s28 = int_to_ptr.vmem [resolvable:$true] %s22_s28 }
   0x3   :  { %p1624_p1 = scmp.lt.u32.totalorder %s1620_s9, %s2238_s1 }
   0x5   :  { %p1626_p2 = pnand %p1624_p1, %p1621_p0 }
   0x7   :  { %1629 = shalt.err (!%p1626_p2)
}
   0x8   :  { %s1630_s14 = scalar_lea.vmem %s23_s28, 1024  ;;  %p1635_p4 = scmp.lt.s32.totalorder %s23_s28, %s23_s28 }
   0x9   :  { %p1631_p3 = scmp.ne.s32.totalorder %s23_s28, %s1630_s14  ;;  %p1636_p5 = scmp.lt.s32.totalorder %s1630_s14, %s1630_s14 }
   0xb   :  { %p1637_p6 = por %p1636_p5, %p1635_p4 }
   0xd   :  { %p1638_p7 = pnand %p1637_p6, %p1631_p3 }
   0xf   :  { %1641 = shalt.err (!%p1638_p7)
}
  0x10   :  { %s1669_s15 = smov 512   ;;  %s1670_s16 = smov 32  }
  0x11   :  { %28 = dma.hbm_to_vmem [thread:$0]  %s2238_s1, 1024, %s23_s28, [#allocation5], %s1669_s15, %s1669_s15, %s1670_s16  }
  0x12   :  { %1664 = dma.done.wait [#allocation5], 1024  }
  0x13   :  { %1665 = vsyncadd [#allocation5], 4294966272  ;;  %v64_v0 = vlaneseq  ;;  %v125_v6 = vld [vmem:[#allocation4 + $0x1] ss:$8 sm:$0xf]  ;;  %s1671_s22 = smov 112  }
  0x14   :  { %v62_v7 = vld [vmem:[#allocation4] ss:$8 sm:$0xf]  ;;  %v187_v12 = vld [vmem:[#allocation4 + $0x2] ss:$8 sm:$0xf] }
  0x15   :  { %v65_v1 = vshrl.u32 %v64_v0, 7  ;;  %v1760_v22 = vld [vmem:[%s2237_s0 + $0x8] sm:$0xff]  ;;  %v1765_v23 = vld [vmem:[%s2237_s0] sm:$0xff]  ;;  %s1672_s23 = smov 111   ;;  %s1673_s24 = smov 113   ;;  %vm90_vm0 = vcmask 908288  }
  0x16   :  { %v249_v27 = vld [vmem:[#allocation4 + $0x3] ss:$8 sm:$0xf]  ;;  %316 = vst [vmem:[#allocation2 + $0x40] sm:$0xf] %v1765_v23  ;;  %s1674_s25 = smov 127  }
  0x17   :  { %v1739_v2 = vsub.s32 0, %v65_v1  ;;  %v1741_v3 = vsub.s32 1, %v65_v1  ;;  %v1743_v4 = vsub.s32 2, %v65_v1  ;;  %v1745_v5 = vsub.s32 3, %v65_v1  ;;  %318 = vst [vmem:[#allocation2 + $0x50] sm:$0xf] %v1760_v22 }
  0x18   :  { %v323_v34 = vld [vmem:[#allocation4 + $0x5] ss:$8 sm:$0xf]  ;;  %v443_v41 = vld [vmem:[#allocation4 + $0x7] ss:$8 sm:$0xf] }
  0x19   :  { %v130_v8 = vrot.slane %v125_v6, %v1739_v2  ;;  %v134_v9 = vrot.slane %v125_v6, %v1741_v3  ;;  %v67_v10 = vrot.slane %v62_v7, %v1739_v2  ;;  %v71_v11 = vrot.slane %v62_v7, %v1741_v3  ;;  %v383_v48 = vld [vmem:[#allocation4 + $0x6] ss:$8 sm:$0xf]  ;;  %s1675_s26 = smov 1   ;;  %s1676_s27 = smov 16  }
  0x1a   :  { %v138_v13 = vrot.slane %v125_v6, %v1743_v4  ;;  %v142_v14 = vrot.slane %v125_v6, %v1745_v5  ;;  %v75_v15 = vrot.slane %v62_v7, %v1743_v4  ;;  %v79_v16 = vrot.slane %v62_v7, %v1745_v5  ;;  %v503_v55 = vld [vmem:[#allocation4 + $0x20] ss:$8 sm:$0xf]  ;;  %s1677_s28 = smov 15   ;;  %s1678_s29 = smov 17  }
  0x1b   :  { %v143_v17 = vcombine.low %v130_v8, %v134_v9  ;;  %v80_v18 = vcombine.low %v67_v10, %v71_v11  ;;  %v200_v20 = vrot.slane %v187_v12, %v1743_v4  ;;  %v204_v21 = vrot.slane %v187_v12, %v1745_v5 }
  0x1c   :  { %v144_v19 = vcombine.low %v138_v13, %v142_v14  ;;  %v81_v24 = vcombine.low %v75_v15, %v79_v16  ;;  %v192_v25 = vrot.slane %v187_v12, %v1739_v2  ;;  %v196_v26 = vrot.slane %v187_v12, %v1741_v3 }
  0x1d   :  { %145 = vrot.lane.b32.xlu1 %v143_v17, %s1671_s22  ;;  %82 = vrot.lane.b32.xlu0 %v80_v18, %s1672_s23  ;;  %v206_v28 = vcombine.low %v200_v20, %v204_v21  ;;  %v262_v29 = vrot.slane %v249_v27, %v1743_v4  ;;  %v266_v30 = vrot.slane %v249_v27, %v1745_v5  ;;  %vm152_vm1 = vcmask 916480  }
  0x1e   :  { %v205_v31 = vcombine.low %v192_v25, %v196_v26  ;;  %v254_v32 = vrot.slane %v249_v27, %v1739_v2  ;;  %v258_v33 = vrot.slane %v249_v27, %v1741_v3  ;;  %v336_v36 = vrot.slane %v323_v34, %v1743_v4 }
  0x1f   :  { %v268_v35 = vcombine.low %v262_v29, %v266_v30  ;;  %v340_v37 = vrot.slane %v323_v34, %v1745_v5  ;;  %v328_v39 = vrot.slane %v323_v34, %v1739_v2  ;;  %v332_v40 = vrot.slane %v323_v34, %v1741_v3 }
  0x20   :  { %v267_v38 = vcombine.low %v254_v32, %v258_v33  ;;  %v456_v42 = vrot.slane %v443_v41, %v1743_v4  ;;  %v460_v43 = vrot.slane %v443_v41, %v1745_v5  ;;  %v448_v44 = vrot.slane %v443_v41, %v1739_v2 }
  0x21   :  { %147 = vrot.lane.b32.xlu1 %v144_v19, %s1671_s22  ;;  %84 = vrot.lane.b32.xlu0 %v81_v24, %s1672_s23  ;;  %v342_v45 = vcombine.low %v336_v36, %v340_v37  ;;  %v341_v46 = vcombine.low %v328_v39, %v332_v40  ;;  %v452_v47 = vrot.slane %v443_v41, %v1741_v3  ;;  %vm214_vm2 = vcmask 924672  }
  0x22   :  { %v462_v49 = vcombine.low %v456_v42, %v460_v43  ;;  %v396_v50 = vrot.slane %v383_v48, %v1743_v4  ;;  %v400_v51 = vrot.slane %v383_v48, %v1745_v5  ;;  %v388_v53 = vrot.slane %v383_v48, %v1739_v2 }
  0x23   :  { %v461_v52 = vcombine.low %v448_v44, %v452_v47  ;;  %v392_v54 = vrot.slane %v383_v48, %v1741_v3  ;;  %v508_v57 = vrot.slane %v503_v55, %v1739_v2  ;;  %v512_v58 = vrot.slane %v503_v55, %v1741_v3 }
  0x24   :  { %v402_v56 = vcombine.low %v396_v50, %v400_v51  ;;  %v516_v60 = vrot.slane %v503_v55, %v1743_v4  ;;  %v520_v61 = vrot.slane %v503_v55, %v1745_v5  ;;  %vm276_vm3 = vcmask 1039360  }
  0x25   :  { %209 = vrot.lane.b32.xlu1 %v206_v28, %s1673_s24  ;;  %207 = vrot.lane.b32.xlu0 %v205_v31, %s1673_s24  ;;  %v401_v59 = vcombine.low %v388_v53, %v392_v54  ;;  %v521_v62 = vcombine.low %v508_v57, %v512_v58  ;;  %vm44_vm4 = vcmask 134144   ;;  %vm295_vm5 = vcmask 7168  }
  0x26   :  { %v522_v63 = vcombine.low %v516_v60, %v520_v61  ;;  %v1679_v29 = vmov 0.0   ;;  %vm88_vm6 = vcmask 1043456   ;;  %vm48_vm7 = vcmask 117760  }
  0x27   :  { %45 = vst.msk [vmem:[#allocation2] sm:$0xf] %vm44_vm4, %v1679_v29  ;;  %661 = vmatprep.mubr.f32.mxu0 %v1679_v29  ;;  %732 = vmatprep.mubr.f32.mxu1 %v1679_v29  ;;  %vm171_vm8 = vcmask 130048   ;;  %vm233_vm9 = vcmask 121856   ;;  %vm52_vm10 = vcmask 1048572   ;;  %v313_v55 = vcombine.high %v1760_v22, %v1760_v22 }
  0x28   :  { %49 = vst.msk [vmem:[#allocation2 + $0x20] sm:$0xf] %vm48_vm7, %v1679_v29  ;;  %vm46_vm11 = vcmask 130052   ;;  %vm50_vm12 = vcmask 7172   ;;  %vm109_vm13 = vcmask 138240   ;;  %vm54_vm14 = vcmask 1044360  }
  0x29   :  { %271 = vrot.lane.b32.xlu1 %v268_v35, %s1674_s25  ;;  %269 = vrot.lane.b32.xlu0 %v267_v38, %s1674_s25  ;;  %53 = vst.msk [vmem:[#allocation2 + $0x58] sm:$0xf0] %vm52_vm10, %v1679_v29  ;;  %319 = vst [vmem:[#allocation2 + $0x58] sm:$0xf] %v313_v55  ;;  %vm56_vm15 = vcmask 1048452   ;;  %vm58_vm4 = vcmask 1044344  }
  0x2a   :  { %47 = vst.msk [vmem:[#allocation2] sm:$0xf0] %vm46_vm11, %v1679_v29  ;;  %vm117_vm7 = vcmask 1043592   ;;  %vm241_vm10 = vcmask 1043576   ;;  %vm378_vm11 = vcmask 1039364  }
  0x2b   :  { %51 = vst.msk [vmem:[#allocation2 + $0x20] sm:$0xf0] %vm50_vm12, %v1679_v29  ;;  %vm179_vm12 = vcmask 1047684  }
  0x2c   :  { %55 = vst.msk [vmem:[#allocation2 + $0x78] sm:$0xf] %vm54_vm14, %v1679_v29  ;;  %vm303_vm14 = vcmask 1047564  }
  0x2d   :  { %345 = vrot.lane.b32.xlu1 %v342_v45, %s1675_s26  ;;  %343 = vrot.lane.b32.xlu0 %v341_v46, %s1675_s26  ;;  %57 = vst.msk [vmem:[#allocation2 + $0x78] sm:$0xf0] %vm56_vm15, %v1679_v29  ;;  %vm2246_vm15 = vcmask 920576  }
  0x2e   :  { %59 = vst.msk [vmem:[#allocation2 + $0x98] sm:$0xf] %vm58_vm4, %v1679_v29  ;;  %vm2247_vm4 = vcmask 916484  }
  0x31   :  { %465 = vrot.lane.b32.xlu1 %v462_v49, %s1676_s27  ;;  %463 = vrot.lane.b32.xlu0 %v461_v52, %s1676_s27 }
  0x35   :  { %405 = vrot.lane.b32.xlu1 %v402_v56, %s1677_s28  ;;  %403 = vrot.lane.b32.xlu0 %v401_v59, %s1677_s28 }
  0x39   :  { %523 = vrot.lane.b32.xlu0 %v521_v62, %s1678_s29  ;;  %525 = vrot.lane.b32.xlu1 %v522_v63, %s1678_s29 }
  0x8f   :  { %v1807_v0 = vpop.permute.xlu1 %145  ;;  %v83_v1 = vpop.permute.xlu0 %82 }
  0x90   :  { %v86_v31 = vrot.slane %v83_v1, 4  ;;  %v149_v36 = vrot.slane %v1807_v0, 4 }
  0x93   :  { %v148_v6 = vpop.permute.xlu1 %147  ;;  %v85_v7 = vpop.permute.xlu0 %84 }
  0x94   :  { %v150_v8 = vrot.slane %v148_v6, 4  ;;  %v87_v9 = vrot.slane %v85_v7, 4 }
  0x96   :  { %v154_v10 = vsel %vm152_vm1, %v148_v6, %v150_v8  ;;  %v92_v11 = vsel %vm90_vm0, %v85_v7, %v87_v9  ;;  %v89_v37 = vsel %vm88_vm6, %v86_v31, %v87_v9  ;;  %v151_v46 = vsel %vm88_vm6, %v149_v36, %v150_v8 }
  0x97   :  { %v1812_v12 = vmul.f32 %v92_v11, %v1760_v22  ;;  %v210_v13 = vpop.permute.xlu1 %209  ;;  %v208_v14 = vpop.permute.xlu0 %207  ;;  %v1815_v15 = vmul.f32 %v154_v10, %v1760_v22  ;;  %v91_v43 = vsel %vm90_vm0, %v83_v1, %v89_v37  ;;  %v153_v52 = vsel %vm152_vm1, %v1807_v0, %v151_v46 }
  0x98   :  { %v212_v16 = vrot.slane %v210_v13, 4  ;;  %v211_v38 = vrot.slane %v208_v14, 4  ;;  %v95_v50 = vmul.f32 %v1765_v23, %v91_v43  ;;  %v157_v57 = vmul.f32 %v1765_v23, %v153_v52 }
  0x99   :  { %105 = vrot.lane.b32.xlu0 %v1812_v12, %s1678_s29  ;;  %169 = vrot.lane.b32.xlu1 %v1815_v15, %s1676_s27  ;;  %v162_v62 = vcombine.low %v1815_v15, %v1815_v15  ;;  %v100_v10 = vcombine.high %v1812_v12, %v1812_v12 }
  0x9a   :  { %v216_v17 = vsel %vm214_vm2, %v210_v13, %v212_v16  ;;  %v213_v44 = vsel %vm88_vm6, %v211_v38, %v212_v16 }
  0x9b   :  { %v272_v18 = vpop.permute.xlu1 %271  ;;  %v270_v19 = vpop.permute.xlu0 %269  ;;  %v1823_v20 = vmul.f32 %v216_v17, %v1760_v22  ;;  %v215_v51 = vsel %vm214_vm2, %v208_v14, %v213_v44  ;;  %v312_v17 = vcombine.high %v1765_v23, %v1765_v23 }
  0x9c   :  { %v274_v21 = vrot.slane %v272_v18, 4  ;;  %v273_v45 = vrot.slane %v270_v19, 4  ;;  %v219_v56 = vmul.f32 %v215_v51, %v1765_v23 }
  0x9d   :  { %229 = vrot.lane.b32.xlu0 %v1823_v20, %s1677_s28  ;;  %v224_v15 = vcombine.high %v1823_v20, %v1823_v20  ;;  %317 = vst [vmem:[#allocation2 + $0x48] sm:$0xf] %v312_v17 }
  0x9e   :  { %v278_v24 = vsel %vm276_vm3, %v272_v18, %v274_v21  ;;  %v275_v53 = vsel %vm88_vm6, %v273_v45, %v274_v21  ;;  %v99_v21 = vcombine.high %v95_v50, %v95_v50 }
  0x9f   :  { %v1828_v25 = vpop.permute.xlu1 %345  ;;  %v344_v26 = vpop.permute.xlu0 %343  ;;  %v282_v27 = vmul.f32 %v278_v24, %v1760_v22  ;;  %v277_v58 = vsel %vm276_vm3, %v270_v19, %v275_v53  ;;  %v161_v19 = vcombine.low %v157_v57, %v157_v57 }
  0xa0   :  { %v347_v28 = vrot.slane %v344_v26, 4  ;;  %v348_v59 = vrot.slane %v1828_v25, 4  ;;  %v281_v61 = vmul.f32 %v277_v58, %v1765_v23 }
  0xa1   :  { %293 = vrot.lane.b32.xlu1 %v282_v27, %s1675_s26  ;;  %v286_v6 = vcombine.low %v282_v27, %v282_v27 }
  0xa2   :  { %v349_v30 = vsel %vm295_vm5, %v347_v28, %v344_v26  ;;  %v350_v0 = vsel %vm88_vm6, %v347_v28, %v348_v59  ;;  %v223_v26 = vcombine.high %v219_v56, %v219_v56 }
  0xa3   :  { %v1837_v32 = vmul.f32 %v349_v30, %v1765_v23  ;;  %v1839_v33 = vpop.permute.xlu0 %463  ;;  %v1842_v34 = vpop.permute.xlu1 %465  ;;  %v351_v7 = vsel %vm295_vm5, %v350_v0, %v1828_v25  ;;  %v285_v25 = vcombine.low %v281_v61, %v281_v61 }
  0xa4   :  { %v467_v35 = vrot.slane %v1839_v33, 4  ;;  %v355_v8 = vmul.f32 %v351_v7, %v1760_v22  ;;  %v468_v18 = vrot.slane %v1842_v34, 4 }
  0xa5   :  { %362 = vrot.lane.b32.xlu0 %v1837_v32, %s1674_s25  ;;  %v358_v11 = vcombine.low %v1837_v32, %v1837_v32 }
  0xa6   :  { %v469_v39 = vsel %vm171_vm8, %v467_v35, %v1839_v33  ;;  %v470_v20 = vsel %vm88_vm6, %v467_v35, %v468_v18  ;;  %v359_v31 = vcombine.low %v355_v8, %v355_v8 }
  0xa7   :  { %v474_v40 = vmul.f32 %v469_v39, %v1765_v23  ;;  %v404_v41 = vpop.permute.xlu0 %403  ;;  %v406_v47 = vpop.permute.xlu1 %405  ;;  %v471_v27 = vsel %vm171_vm8, %v470_v20, %v1842_v34 }
  0xa8   :  { %v407_v42 = vrot.slane %v404_v41, 4  ;;  %v408_v54 = vrot.slane %v406_v47, 4 }
  0xa9   :  { %482 = vrot.lane.b32.xlu0 %v474_v40, %s1671_s22  ;;  %v478_v16 = vcombine.low %v474_v40, %v474_v40 }
  0xaa   :  { %v409_v48 = vsel %vm233_vm9, %v407_v42, %v404_v41  ;;  %v410_v60 = vsel %vm88_vm6, %v407_v42, %v408_v54 }
  0xab   :  { %v414_v49 = vmul.f32 %v409_v48, %v1765_v23  ;;  %v411_v63 = vsel %vm233_vm9, %v410_v60, %v406_v47  ;;  %v524_v13 = vpop.permute.xlu0 %523  ;;  %v526_v30 = vpop.permute.xlu1 %525 }
  0xac   :  { %v415_v1 = vmul.f32 %v411_v63, %v1760_v22  ;;  %v527_v14 = vrot.slane %v524_v13, 4  ;;  %v528_v32 = vrot.slane %v526_v30, 4 }
  0xad   :  { %420 = vrot.lane.b32.xlu1 %v414_v49, %s1673_s24  ;;  %101 = vrot.lane.b32.xlu0 %v95_v50, %s1678_s29  ;;  %v418_v9 = vcombine.high %v414_v49, %v414_v49 }
  0xae   :  { %v529_v12 = vsel %vm109_vm13, %v527_v14, %v524_v13  ;;  %v419_v33 = vcombine.high %v415_v1, %v415_v1  ;;  %v530_v34 = vsel %vm88_vm6, %v527_v14, %v528_v32 }
  0xaf   :  { %v534_v24 = vmul.f32 %v529_v12, %v1765_v23  ;;  %v475_v23 = vmul.f32 %v471_v27, %v1760_v22  ;;  %v531_v36 = vsel %vm109_vm13, %v530_v34, %v526_v30 }
  0xb0   :  { %v535_v37 = vmul.f32 %v531_v36, %v1760_v22 }
  0xb1   :  { %165 = vrot.lane.b32.xlu1 %v157_v57, %s1676_s27  ;;  %225 = vrot.lane.b32.xlu0 %v219_v56, %s1677_s28  ;;  %v538_v28 = vcombine.high %v534_v24, %v534_v24  ;;  %v479_v35 = vcombine.low %v475_v23, %v475_v23 }
  0xb2   :  { %v539_v38 = vcombine.high %v535_v37, %v535_v37 }
  0xb5   :  { %289 = vrot.lane.b32.xlu1 %v281_v61, %s1675_s26  ;;  %167 = vrot.lane.b32.xlu0 %v162_v62, %s1676_s27 }
  0xb9   :  { %424 = vrot.lane.b32.xlu1 %v415_v1, %s1673_s24  ;;  %291 = vrot.lane.b32.xlu0 %v286_v6, %s1675_s26 }
  0xbd   :  { %366 = vrot.lane.b32.xlu1 %v355_v8, %s1674_s25  ;;  %422 = vrot.lane.b32.xlu0 %v418_v9, %s1673_s24 }
  0xc1   :  { %107 = vrot.lane.b32.xlu1 %v100_v10, %s1678_s29  ;;  %360 = vrot.lane.b32.xlu0 %v358_v11, %s1674_s25 }
  0xc5   :  { %231 = vrot.lane.b32.xlu1 %v224_v15, %s1677_s28  ;;  %480 = vrot.lane.b32.xlu0 %v478_v16, %s1671_s22 }
  0xc9   :  { %163 = vrot.lane.b32.xlu0 %v161_v19, %s1676_s27  ;;  %103 = vrot.lane.b32.xlu1 %v99_v21, %s1678_s29 }
  0xcd   :  { %287 = vrot.lane.b32.xlu0 %v285_v25, %s1675_s26  ;;  %227 = vrot.lane.b32.xlu1 %v223_v26, %s1677_s28 }
  0xd1   :  { %542 = vrot.lane.b32.xlu0 %v538_v28, %s1672_s23  ;;  %364 = vrot.lane.b32.xlu1 %v359_v31, %s1674_s25 }
  0xd5   :  { %426 = vrot.lane.b32.xlu0 %v419_v33, %s1673_s24  ;;  %484 = vrot.lane.b32.xlu1 %v479_v35, %s1671_s22 }
  0xd9   :  { %540 = vrot.lane.b32.xlu0 %v534_v24, %s1672_s23  ;;  %486 = vrot.lane.b32.xlu1 %v475_v23, %s1671_s22 }
  0xdd   :  { %544 = vrot.lane.b32.xlu1 %v535_v37, %s1672_s23 }
  0xe1   :  { %546 = vrot.lane.b32.xlu1 %v539_v38, %s1672_s23 }
 0x10b   :  { %v106_v39 = vpop.permute.xlu0 %105  ;;  %v170_v41 = vpop.permute.xlu1 %169 }
 0x10f   :  { %v230_v40 = vpop.permute.xlu0 %229 }
 0x113   :  { %v294_v43 = vpop.permute.xlu1 %293 }
 0x117   :  { %v1933_v42 = vpop.permute.xlu0 %362 }
 0x11b   :  { %v1935_v44 = vpop.permute.xlu0 %482 }
 0x11f   :  { %v421_v45 = vpop.permute.xlu1 %420  ;;  %v102_v46 = vpop.permute.xlu0 %101 }
 0x120   :  { %118 = vst.msk [vmem:[#allocation2] sm:$0xf] %vm117_vm7, %v102_v46 }
 0x123   :  { %v166_v22 = vpop.permute.xlu1 %165  ;;  %v226_v47 = vpop.permute.xlu0 %225 }
 0x124   :  { %242 = vst.msk [vmem:[#allocation2 + $0x20] sm:$0xf] %vm241_vm10, %v226_v47 }
 0x127   :  { %v290_v48 = vpop.permute.xlu1 %289  ;;  %v168_v49 = vpop.permute.xlu0 %167 }
 0x128   :  { %v173_v50 = vsel %vm171_vm8, %v166_v22, %v168_v49  ;;  %v174_v51 = vsel %vm171_vm8, %v168_v49, %v170_v41 }
 0x129   :  { %182 = vst [vmem:[#allocation2 + $0x10] sm:$0xf0] %v173_v50  ;;  %183 = vst [vmem:[#allocation2 + $0x18] sm:$0xf0] %v174_v51 }
 0x12b   :  { %v425_v52 = vpop.permute.xlu1 %424  ;;  %v292_v53 = vpop.permute.xlu0 %291 }
 0x12c   :  { %v297_v54 = vsel %vm295_vm5, %v290_v48, %v292_v53  ;;  %v298_v55 = vsel %vm295_vm5, %v292_v53, %v294_v43 }
 0x12d   :  { %306 = vst [vmem:[#allocation2 + $0x30] sm:$0xf0] %v297_v54  ;;  %307 = vst [vmem:[#allocation2 + $0x38] sm:$0xf0] %v298_v55 }
 0x12f   :  { %v367_v56 = vpop.permute.xlu1 %366  ;;  %v423_v57 = vpop.permute.xlu0 %422 }
 0x130   :  { %379 = vst.msk [vmem:[#allocation2 + $0x58] sm:$0xf0] %vm378_vm11, %v367_v56  ;;  %v428_v58 = vsel %vm214_vm2, %v421_v45, %v423_v57  ;;  %v429_v59 = vsel %vm214_vm2, %v423_v57, %v425_v52 }
 0x131   :  { %435 = vst [vmem:[#allocation2 + $0x60] sm:$0xf] %v428_v58  ;;  %436 = vst [vmem:[#allocation2 + $0x68] sm:$0xf] %v429_v59 }
 0x133   :  { %v108_v60 = vpop.permute.xlu1 %107  ;;  %v361_v61 = vpop.permute.xlu0 %360 }
 0x134   :  { %v112_v62 = vsel %vm109_vm13, %v106_v39, %v108_v60  ;;  %v368_v63 = vsel %vm276_vm3, %v361_v61, %v1933_v42  ;;  %v560_v60 = vld [vmem:[%s2239_s2] sm:$0xf] }
 0x135   :  { %121 = vst [vmem:[#allocation2 + $0x18] sm:$0xf] %v112_v62  ;;  %375 = vst [vmem:[#allocation2 + $0x40] sm:$0xf0] %v368_v63 }
 0x137   :  { %v232_v0 = vpop.permute.xlu1 %231  ;;  %v481_v1 = vpop.permute.xlu0 %480 }
 0x138   :  { %v236_v6 = vsel %vm233_vm9, %v230_v40, %v232_v0  ;;  %v488_v7 = vsel %vm152_vm1, %v481_v1, %v1935_v44 }
 0x139   :  { %245 = vst [vmem:[#allocation2 + $0x38] sm:$0xf] %v236_v6  ;;  %495 = vst [vmem:[#allocation2 + $0x60] sm:$0xf0] %v488_v7 }
 0x13b   :  { %v164_v8 = vpop.permute.xlu0 %163  ;;  %v104_v9 = vpop.permute.xlu1 %103 }
 0x13c   :  { %v172_v10 = vsel %vm171_vm8, %v164_v8, %v166_v22  ;;  %180 = vst.msk [vmem:[#allocation2] sm:$0xf0] %vm179_vm12, %v164_v8  ;;  %v110_v11 = vsel %vm109_vm13, %v102_v46, %v104_v9  ;;  %v111_v13 = vsel %vm109_vm13, %v104_v9, %v106_v39  ;;  %v564_v12 = vld [vmem:[#allocation2 + $0x18] sm:$0xff]  ;;  %v569_v49 = vld [vmem:[#allocation2 + $0x40] sm:$0xff] }
 0x13d   :  { %181 = vst [vmem:[#allocation2 + $0x8] sm:$0xf0] %v172_v10  ;;  %119 = vst [vmem:[#allocation2 + $0x8] sm:$0xf] %v110_v11 }
 0x13e   :  { %120 = vst [vmem:[#allocation2 + $0x10] sm:$0xf] %v111_v13 }
 0x13f   :  { %v288_v14 = vpop.permute.xlu0 %287  ;;  %v228_v15 = vpop.permute.xlu1 %227 }
 0x140   :  { %v296_v16 = vsel %vm295_vm5, %v288_v14, %v290_v48  ;;  %304 = vst.msk [vmem:[#allocation2 + $0x20] sm:$0xf0] %vm303_vm14, %v288_v14  ;;  %v234_v17 = vsel %vm233_vm9, %v226_v47, %v228_v15  ;;  %v235_v18 = vsel %vm233_vm9, %v228_v15, %v230_v40  ;;  %v568_v19 = vld [vmem:[#allocation2 + $0x38] sm:$0xff]  ;;  %v573_v45 = vld [vmem:[#allocation2 + $0x60] sm:$0xff] }
 0x141   :  { %305 = vst [vmem:[#allocation2 + $0x28] sm:$0xf0] %v296_v16  ;;  %243 = vst [vmem:[#allocation2 + $0x28] sm:$0xf] %v234_v17  ;;  %v1574_v21 = vpack.c.bf16 %v568_v19, %v564_v12  ;;  %v1572_v50 = vpack.c.bf16 %v573_v45, %v569_v49 }
 0x142   :  { %244 = vst [vmem:[#allocation2 + $0x30] sm:$0xf] %v235_v18 }
 0x143   :  { %1575 = vmatprep.subr.bf16.mxu1 %v1574_v21  ;;  %v543_v20 = vpop.permute.xlu0 %542  ;;  %v365_v24 = vpop.permute.xlu1 %364  ;;  %v561_v38 = vld [vmem:[#allocation2] sm:$0xff] }
 0x144   :  { %v369_v25 = vsel %vm276_vm3, %v1933_v42, %v365_v24  ;;  %v370_v26 = vsel %vm276_vm3, %v365_v24, %v367_v56  ;;  %v562_v30 = vld [vmem:[#allocation2 + $0x8] sm:$0xff] }
 0x145   :  { %376 = vst [vmem:[#allocation2 + $0x48] sm:$0xf0] %v369_v25  ;;  %377 = vst [vmem:[#allocation2 + $0x50] sm:$0xf0] %v370_v26  ;;  %v563_v35 = vld [vmem:[#allocation2 + $0x10] sm:$0xff] }
 0x147   :  { %v427_v27 = vpop.permute.xlu0 %426  ;;  %v485_v28 = vpop.permute.xlu1 %484  ;;  %v565_v31 = vld [vmem:[#allocation2 + $0x20] sm:$0xff] }
 0x148   :  { %v430_v23 = vsel %vm214_vm2, %v425_v52, %v427_v27  ;;  %439 = vst.msk [vmem:[#allocation2 + $0x78] sm:$0xf] %vm2246_vm15, %v427_v27  ;;  %v489_v32 = vsel %vm152_vm1, %v1935_v44, %v485_v28  ;;  %v566_v33 = vld [vmem:[#allocation2 + $0x28] sm:$0xff]  ;;  %v1568_v39 = vpack.c.bf16 %v565_v31, %v561_v38  ;;  %vm558_vm15 = vcmask 904192   ;;  %v572_v52 = vld [vmem:[#allocation2 + $0x58] sm:$0xff] }
 0x149   :  { %v567_v34 = vld [vmem:[#allocation2 + $0x30] sm:$0xff]  ;;  %437 = vst [vmem:[#allocation2 + $0x70] sm:$0xf] %v430_v23  ;;  %496 = vst [vmem:[#allocation2 + $0x68] sm:$0xf0] %v489_v32  ;;  %v1566_v36 = vpack.c.bf16 %v566_v33, %v562_v30 }
 0x14a   :  { %v1576_v37 = vpack.c.bf16 %v567_v34, %v563_v35  ;;  %v807_v27 = vld [vmem:[#allocation4] ss:$8 sm:$0xf]  ;;  %v865_v33 = vld [vmem:[#allocation4 + $0x1] ss:$8 sm:$0xf] }
 0x14b   :  { %v541_v40 = vpop.permute.xlu0 %540  ;;  %1567 = vmatprep.subr.bf16.mxu0 %v1566_v36  ;;  %v487_v41 = vpop.permute.xlu1 %486  ;;  %v816_v30 = vrot.slane %v807_v27, %v1741_v3  ;;  %v820_v23 = vrot.slane %v807_v27, %v1743_v4  ;;  %v824_v32 = vrot.slane %v807_v27, %v1745_v5  ;;  %v870_v34 = vrot.slane %v865_v33, %v1739_v2 }
 0x14c   :  { %1577 = vmatpush1.bf16.msra.mxu1 %v1576_v37  ;;  %v548_v42 = vsel %vm90_vm0, %v541_v40, %v543_v20  ;;  %v490_v43 = vsel %vm152_vm1, %v485_v28, %v487_v41  ;;  %499 = vst.msk [vmem:[#allocation2 + $0x78] sm:$0xf0] %vm2247_vm4, %v487_v41  ;;  %1569 = vmatpush1.bf16.msra.mxu0 %v1568_v39  ;;  %v570_v22 = vld [vmem:[#allocation2 + $0x48] sm:$0xff]  ;;  %v571_v56 = vld [vmem:[#allocation2 + $0x50] sm:$0xff]  ;;  %vm581_vm4 = vcmask 293888   ;;  %v1680_v41 = vmov 0  }
 0x14d   :  { %555 = vst [vmem:[#allocation2 + $0x80] sm:$0xf] %v548_v42  ;;  %497 = vst [vmem:[#allocation2 + $0x70] sm:$0xf0] %v490_v43  ;;  %v812_v28 = vrot.slane %v807_v27, %v1739_v2  ;;  %v826_v35 = vcombine.low %v820_v23, %v824_v32  ;;  %v874_v36 = vrot.slane %v865_v33, %v1741_v3  ;;  %1612 = vset.pattern.permute.xlu0 %v1680_v41 }
 0x14e   :  { %v878_v38 = vrot.slane %v865_v33, %v1743_v4  ;;  %v882_v39 = vrot.slane %v865_v33, %v1745_v5  ;;  %v923_v40 = vld [vmem:[#allocation4 + $0x2] ss:$8 sm:$0xf]  ;;  %1613 = vset.pattern.permute.xlu1 %v1680_v41 }
 0x14f   :  { %v545_v44 = vpop.permute.xlu1 %544  ;;  %v825_v31 = vcombine.low %v812_v28, %v816_v30  ;;  %v883_v37 = vcombine.low %v870_v34, %v874_v36  ;;  %v928_v43 = vrot.slane %v923_v40, %v1739_v2 }
 0x150   :  { %v549_v46 = vsel %vm90_vm0, %v543_v20, %v545_v44  ;;  %v574_v47 = vld [vmem:[#allocation2 + $0x68] sm:$0xff]  ;;  %v884_v42 = vcombine.low %v878_v38, %v882_v39 }
 0x151   :  { %556 = vst [vmem:[#allocation2 + $0x88] sm:$0xf] %v549_v46  ;;  %v1570_v48 = vpack.c.bf16 %v574_v47, %v570_v22  ;;  %v936_v46 = vrot.slane %v923_v40, %v1743_v4  ;;  %v940_v22 = vrot.slane %v923_v40, %v1745_v5 }
 0x153   :  { %v547_v51 = vpop.permute.xlu1 %546  ;;  %1571 = vmatprep.subr.bf16.mxu0 %v1570_v48  ;;  %v576_v53 = vld [vmem:[#allocation2 + $0x78] sm:$0xff]  ;;  %v942_v47 = vcombine.low %v936_v46, %v940_v22 }
 0x154   :  { %v550_v54 = vsel %vm90_vm0, %v545_v44, %v547_v51  ;;  %559 = vst.msk [vmem:[#allocation2 + $0x98] sm:$0xf] %vm558_vm15, %v547_v51  ;;  %1573 = vmatpush1.bf16.msra.mxu0 %v1572_v50  ;;  %v1578_v55 = vpack.c.bf16 %v576_v53, %v572_v52  ;;  %v575_v57 = vld [vmem:[#allocation2 + $0x70] sm:$0xff]  ;;  %v577_v61 = vld [vmem:[#allocation2 + $0x80] sm:$0xf]  ;;  %v932_v44 = vrot.slane %v923_v40, %v1741_v3 }
 0x155   :  { %557 = vst [vmem:[#allocation2 + $0x90] sm:$0xf] %v550_v54  ;;  %v1580_v58 = vpack.c.bf16 %v575_v57, %v571_v56  ;;  %v981_v56 = vld [vmem:[#allocation4 + $0x3] ss:$8 sm:$0xf] }
 0x156   :  { %1579 = vmatprep.subr.bf16.mxu1 %v1578_v55  ;;  %v941_v45 = vcombine.low %v928_v43, %v932_v44  ;;  %v766_v57 = vld [vmem:[%s2240_s3] sm:$0xf] }
 0x157   :  { %1581 = vmatpush1.bf16.msra.mxu1 %v1580_v58  ;;  %v986_v58 = vrot.slane %v981_v56, %v1739_v2 }
 0x158   :  { %v578_v59 = vld [vmem:[#allocation2 + $0x88] sm:$0xf] }
 0x159   :  { %1552 = vmatprep.subr.msk.mxu0 %vm88_vm6, %v578_v59  ;;  %v990_v59 = vrot.slane %v981_v56, %v1741_v3 }
 0x15a   :  { %1553 = vmatpush1.msk.msra.mxu0 %vm88_vm6, %v577_v61 }
 0x15b   :  { %1554 = vmatmul.mubr.msk.f32.vlgmr.msra.gmra.mrb[0].mxu0 %vm581_vm4, %v560_v60  ;;  %v580_v62 = vld [vmem:[#allocation2 + $0x98] sm:$0xf] }
 0x15c   :  { %1555 = vmatprep.subr.msk.mxu1 %vm88_vm6, %v580_v62  ;;  %v579_v63 = vld [vmem:[#allocation2 + $0x90] sm:$0xf]  ;;  %1381 = vmatprep.mubr.f32.mxu0 %v1679_v29 }
 0x15d   :  { %1556 = vmatpush1.msk.msra.mxu1 %vm88_vm6, %v579_v63  ;;  %v770_v63 = vld [vmem:[%s2241_s4] sm:$0xf] }
 0x15e   :  { %1557 = vmatmul.mubr.msk.f32.vlgmr.msra.gmra.mrb[0].mxu1 %vm581_vm4, %v560_v60  ;;  %v1051_v60 = vld [vmem:[#allocation4 + $0x5] ss:$8 sm:$0xf] }
 0x15f   :  { %1452 = vmatprep.mubr.f32.mxu1 %v1679_v29 }
 0x22e   :  { %v1984_v0 = vpop.f32.mrb[0].mxu0 }
 0x22f   :  { %v739_v1 = vsel %vm88_vm6, %v1984_v0, 0.0  ;;  %v749_v6 = vmul.f32 %v1984_v0, %v1984_v0  ;;  %v1990_v7 = vpop.f32.mrb[1].mxu0 }
 0x230   :  { %v740_v8 = vsel %vm88_vm6, %v1990_v7, 0.0  ;;  %v750_v9 = vmul.f32 %v1990_v7, %v1990_v7 }
 0x231   :  { %v753_v10 = vsel %vm88_vm6, %v749_v6, 0.0  ;;  %v741_v11 = vadd.f32 %v740_v8, %v739_v1  ;;  %v1997_v29 = vpop.f32.mrb[0].mxu1  ;;  %v1056_v1 = vrot.slane %v1051_v60, %v1739_v2  ;;  %v1060_v6 = vrot.slane %v1051_v60, %v1741_v3 }
 0x232   :  { %v754_v13 = vsel %vm88_vm6, %v750_v9, 0.0  ;;  %v742_v14 = vsel %vm88_vm6, %v1997_v29, 0.0  ;;  %v751_v15 = vmul.f32 %v1997_v29, %v1997_v29  ;;  %v2004_v16 = vpop.f32.mrb[1].mxu1  ;;  %v999_v9 = vcombine.low %v986_v58, %v990_v59 }
 0x233   :  { %v752_v17 = vmul.f32 %v2004_v16, %v2004_v16  ;;  %v743_v18 = vadd.f32 %v742_v14, %v741_v11  ;;  %v744_v12 = vsel %vm88_vm6, %v2004_v16, 0.0  ;;  %v755_v19 = vadd.f32 %v754_v13, %v753_v10  ;;  %v1167_v13 = vld [vmem:[#allocation4 + $0x7] ss:$8 sm:$0xf] }
 0x234   :  { %v756_v21 = vsel %vm88_vm6, %v751_v15, 0.0  ;;  %v994_v10 = vrot.slane %v981_v56, %v1743_v4  ;;  %v998_v11 = vrot.slane %v981_v56, %v1745_v5  ;;  %v1069_v15 = vcombine.low %v1056_v1, %v1060_v6 }
 0x235   :  { %v745_v20 = vadd.f32 %v744_v12, %v743_v18  ;;  %v757_v24 = vadd.f32 %v756_v21, %v755_v19  ;;  %v758_v25 = vsel %vm88_vm6, %v752_v17, 0.0  ;;  %v1172_v17 = vrot.slane %v1167_v13, %v1739_v2 }
 0x236   :  { %v1176_v18 = vrot.slane %v1167_v13, %v1741_v3  ;;  %v1000_v12 = vcombine.low %v994_v10, %v998_v11  ;;  %v1064_v19 = vrot.slane %v1051_v60, %v1743_v4  ;;  %v1068_v21 = vrot.slane %v1051_v60, %v1745_v5 }
 0x237   :  { %746 = vadd.xlane.f32.xlu0 %v745_v20  ;;  %v759_v26 = vadd.f32 %v758_v25, %v757_v24  ;;  %v1109_v20 = vld [vmem:[#allocation4 + $0x6] ss:$8 sm:$0xf]  ;;  %v1180_v28 = vrot.slane %v1167_v13, %v1743_v4  ;;  %v1184_v30 = vrot.slane %v1167_v13, %v1745_v5 }
 0x238   :  { %v1185_v24 = vcombine.low %v1172_v17, %v1176_v18  ;;  %v1114_v25 = vrot.slane %v1109_v20, %v1739_v2  ;;  %v1070_v27 = vcombine.low %v1064_v19, %v1068_v21  ;;  %v1122_v34 = vrot.slane %v1109_v20, %v1743_v4 }
 0x239   :  { %760 = vadd.xlane.f32.xlu1 %v759_v26  ;;  %v1118_v26 = vrot.slane %v1109_v20, %v1741_v3  ;;  %v1126_v36 = vrot.slane %v1109_v20, %v1745_v5 }
 0x23b   :  { %v1127_v23 = vcombine.low %v1114_v25, %v1118_v26  ;;  %v1128_v38 = vcombine.low %v1122_v34, %v1126_v36 }
 0x24a   :  { %827 = vrot.lane.b32.xlu1 %v825_v31, %s1672_s23  ;;  %v1225_v31 = vld [vmem:[#allocation4 + $0x20] ss:$8 sm:$0xf] }
 0x24b   :  { %v1230_v32 = vrot.slane %v1225_v31, %v1739_v2  ;;  %v1234_v33 = vrot.slane %v1225_v31, %v1741_v3  ;;  %v1238_v39 = vrot.slane %v1225_v31, %v1743_v4  ;;  %v1242_v2 = vrot.slane %v1225_v31, %v1745_v5 }
 0x24d   :  { %v1244_v3 = vcombine.low %v1238_v39, %v1242_v2 }
 0x24e   :  { %829 = vrot.lane.b32.xlu1 %v826_v35, %s1672_s23  ;;  %v1186_v35 = vcombine.low %v1180_v28, %v1184_v30 }
 0x252   :  { %885 = vrot.lane.b32.xlu1 %v883_v37, %s1671_s22  ;;  %v1243_v37 = vcombine.low %v1230_v32, %v1234_v33 }
 0x256   :  { %887 = vrot.lane.b32.xlu1 %v884_v42, %s1671_s22 }
 0x25a   :  { %943 = vrot.lane.b32.xlu1 %v941_v45, %s1673_s24 }
 0x25e   :  { %945 = vrot.lane.b32.xlu1 %v942_v47, %s1673_s24 }
 0x2c4   :  { %v747_v48 = vpop.xlane.xlu0 %746 }
 0x2c5   :  { %v748_v49 = vmul.f32 0.001953125, %v747_v48 }
 0x2c6   :  { %v761_v50 = vpop.xlane.xlu1 %760 }
 0x2c7   :  { %v763_v51 = vmul.f32 %v748_v49, %v748_v49  ;;  %v762_v52 = vmul.f32 0.001953125, %v761_v50 }
 0x2c9   :  { %v764_v53 = vsub.f32 %v762_v52, %v763_v51 }
 0x2ca   :  { %v828_v40 = vpop.permute.xlu1 %827 }
 0x2cb   :  { %v765_v54 = vmax.f32 %v764_v53, 0.0 }
 0x2cd   :  { %v767_v55 = vadd.f32 1e-05, %v765_v54 }
 0x2ce   :  { %v830_v41 = vpop.permute.xlu1 %829 }
 0x2cf   :  { %1616 = vrsqrt.f32 %v767_v55  ;;  %v832_v50 = vrot.slane %v830_v41, 4 }
 0x2d1   :  { %v835_v31 = vsel %vm90_vm0, %v830_v41, %v832_v50 }
 0x2d2   :  { %v886_v42 = vpop.permute.xlu1 %885 }
 0x2d3   :  { %v889_v22 = vrot.slane %v886_v42, 4 }
 0x2d6   :  { %v888_v43 = vpop.permute.xlu1 %887 }
 0x2d7   :  { %v890_v47 = vrot.slane %v888_v43, 4 }
 0x2d9   :  { %v1617_v61 = vpop.eup %1616  ;;  %v893_v28 = vsel %vm152_vm1, %v888_v43, %v890_v47 }
 0x2da   :  { %v769_v62 = vmul.f32 %v1617_v61, %v766_v57  ;;  %v944_v44 = vpop.permute.xlu1 %943  ;;  %v891_v57 = vsel %vm88_vm6, %v889_v22, %v890_v47 }
 0x2db   :  { %v892_v13 = vsel %vm152_vm1, %v886_v42, %v891_v57 }
 0x2dc   :  { %775 = vperm.xlu0 %1612, %v769_v62   ;;  %v771_v8 = vmul.f32 %v769_v62, %v748_v49  ;;  %v831_v49 = vrot.slane %v828_v40, 4  ;;  %v947_v62 = vrot.slane %v944_v44, 4 }
 0x2de   :  { %v772_v14 = vsub.f32 %v770_v63, %v771_v8  ;;  %v2066_v45 = vpop.permute.xlu1 %945 }
 0x2e0   :  { %784 = vperm.xlu1 %1613, %v772_v14   ;;  %1001 = vrot.lane.b32.xlu0 %v999_v9, %s1674_s25 }
 0x2e4   :  { %1071 = vrot.lane.b32.xlu0 %v1069_v15, %s1675_s26  ;;  %1003 = vrot.lane.b32.xlu1 %v1000_v12, %s1674_s25 }
 0x2e8   :  { %1187 = vrot.lane.b32.xlu0 %v1185_v24, %s1676_s27  ;;  %1073 = vrot.lane.b32.xlu1 %v1070_v27, %s1675_s26 }
 0x2ec   :  { %1129 = vrot.lane.b32.xlu0 %v1127_v23, %s1677_s28  ;;  %1189 = vrot.lane.b32.xlu1 %v1186_v35, %s1676_s27 }
 0x2f0   :  { %1245 = vrot.lane.b32.xlu0 %v1243_v37, %s1678_s29  ;;  %1131 = vrot.lane.b32.xlu1 %v1128_v38, %s1677_s28 }
 0x2f4   :  { %1247 = vrot.lane.b32.xlu1 %v1244_v3, %s1678_s29 }
 0x35b   :  { %v776_v46 = vpop.permute.xlu0 %775 }
 0x35c   :  { %v778_v4 = vmul.f32 %v776_v46, %v1984_v0  ;;  %v779_v5 = vmul.f32 %v776_v46, %v1990_v7  ;;  %v780_v48 = vmul.f32 %v776_v46, %v1997_v29  ;;  %v781_v51 = vmul.f32 %v776_v46, %v2004_v16 }
 0x35d   :  { %v833_v7 = vsel %vm88_vm6, %v831_v49, %v832_v50  ;;  %v948_v29 = vrot.slane %v2066_v45, 4 }
 0x35e   :  { %v834_v17 = vsel %vm90_vm0, %v828_v40, %v833_v7 }
 0x35f   :  { %v1002_v52 = vpop.permute.xlu0 %1001  ;;  %v785_v53 = vpop.permute.xlu1 %784  ;;  %v949_v18 = vsel %vm88_vm6, %v947_v62, %v948_v29  ;;  %v951_v38 = vsel %vm214_vm2, %v2066_v45, %v948_v29 }
 0x360   :  { %v787_v54 = vadd.f32 %v785_v53, %v778_v4  ;;  %v788_v55 = vadd.f32 %v785_v53, %v779_v5  ;;  %v789_v56 = vadd.f32 %v785_v53, %v780_v48  ;;  %v790_v58 = vadd.f32 %v785_v53, %v781_v51 }
 0x361   :  { %v1005_v59 = vrot.slane %v1002_v52, 4  ;;  %v950_v24 = vsel %vm214_vm2, %v944_v44, %v949_v18 }
 0x362   :  { %v791_v60 = vmax.f32 %v787_v54, 0.0  ;;  %v792_v61 = vmax.f32 %v788_v55, 0.0  ;;  %v793_v0 = vmax.f32 %v789_v56, 0.0  ;;  %v794_v63 = vmax.f32 %v790_v58, 0.0 }
 0x363   :  { %v1072_v1 = vpop.permute.xlu0 %1071  ;;  %v1004_v16 = vpop.permute.xlu1 %1003 }
 0x364   :  { %v2075_v6 = vcombine.low %v791_v60, %v792_v61  ;;  %v1564_v8 = vcombine.low %v792_v61, %v792_v61  ;;  %v1006_v9 = vrot.slane %v1004_v16, 4  ;;  %v2077_v10 = vcombine.low %v793_v0, %v794_v63 }
 0x365   :  { %v1565_v11 = vcombine.low %v794_v63, %v794_v63  ;;  %v1075_v34 = vrot.slane %v1072_v1, 4 }
 0x366   :  { %1046 = vst [vmem:[#allocation2 + $0x48] sm:$0xf] %v1564_v8  ;;  %1045 = vst [vmem:[#allocation2 + $0x40] sm:$0xf] %v2075_v6  ;;  %v1007_v14 = vsel %vm88_vm6, %v1005_v59, %v1006_v9  ;;  %v896_v15 = vmul.f32 %v892_v13, %v2075_v6  ;;  %v838_v21 = vmul.f32 %v834_v17, %v2075_v6 }
 0x367   :  { %1048 = vst [vmem:[#allocation2 + $0x58] sm:$0xf] %v1565_v11  ;;  %1047 = vst [vmem:[#allocation2 + $0x50] sm:$0xf] %v2077_v10  ;;  %v2086_v12 = vpop.permute.xlu0 %1187  ;;  %v1074_v19 = vpop.permute.xlu1 %1073  ;;  %v1008_v20 = vsel %vm276_vm3, %v1002_v52, %v1007_v14  ;;  %v954_v27 = vmul.f32 %v950_v24, %v2075_v6  ;;  %v897_v23 = vmul.f32 %v893_v28, %v2077_v10 }
 0x368   :  { %904 = vrot.lane.b32.xlu1 %v896_v15, %s1676_s27  ;;  %844 = vrot.lane.b32.xlu0 %v838_v21, %s1678_s29  ;;  %v1012_v25 = vmul.f32 %v1008_v20, %v2075_v6  ;;  %v1009_v32 = vsel %vm276_vm3, %v1004_v16, %v1006_v9  ;;  %v839_v35 = vmul.f32 %v835_v31, %v2077_v10  ;;  %v1191_v42 = vrot.slane %v2086_v12, 4 }
 0x369   :  { %v1013_v39 = vmul.f32 %v1009_v32, %v2077_v10  ;;  %v955_v40 = vmul.f32 %v951_v38, %v2077_v10  ;;  %v1077_v41 = vsel %vm295_vm5, %v1075_v34, %v1072_v1  ;;  %v1076_v43 = vrot.slane %v1074_v19, 4 }
 0x36a   :  { %v1082_v45 = vmul.f32 %v1077_v41, %v2075_v6  ;;  %v1193_v22 = vsel %vm171_vm8, %v1191_v42, %v2086_v12  ;;  %v900_v50 = vcombine.low %v896_v15, %v896_v15  ;;  %v842_v51 = vcombine.high %v838_v21, %v838_v21 }
 0x36b   :  { %v1190_v26 = vpop.permute.xlu1 %1189  ;;  %v1130_v30 = vpop.permute.xlu0 %1129  ;;  %v1078_v47 = vsel %vm88_vm6, %v1075_v34, %v1076_v43  ;;  %v1198_v5 = vmul.f32 %v1193_v22, %v2075_v6  ;;  %v1016_v52 = vcombine.low %v1012_v25, %v1012_v25  ;;  %v958_v53 = vcombine.high %v954_v27, %v954_v27 }
 0x36c   :  { %1020 = vrot.lane.b32.xlu1 %v1012_v25, %s1675_s26  ;;  %960 = vrot.lane.b32.xlu0 %v954_v27, %s1677_s28  ;;  %v1133_v36 = vrot.slane %v1130_v30, 4  ;;  %v1079_v48 = vsel %vm295_vm5, %v1078_v47, %v1074_v19  ;;  %v901_v54 = vcombine.low %v897_v23, %v897_v23  ;;  %v1192_v55 = vrot.slane %v1190_v26, 4 }
 0x36d   :  { %v1083_v49 = vmul.f32 %v1079_v48, %v2077_v10  ;;  %v843_v56 = vcombine.high %v839_v35, %v839_v35  ;;  %v1017_v57 = vcombine.low %v1013_v39, %v1013_v39  ;;  %v959_v59 = vcombine.high %v955_v40, %v955_v40 }
 0x36e   :  { %v1135_v46 = vsel %vm233_vm9, %v1133_v36, %v1130_v30  ;;  %v1194_v58 = vsel %vm88_vm6, %v1191_v42, %v1192_v55  ;;  %v1086_v63 = vcombine.low %v1082_v45, %v1082_v45  ;;  %v1202_v9 = vcombine.low %v1198_v5, %v1198_v5 }
 0x36f   :  { %v1132_v33 = vpop.permute.xlu1 %1131  ;;  %v1140_v4 = vmul.f32 %v1135_v46, %v2075_v6  ;;  %v1195_v60 = vsel %vm171_vm8, %v1194_v58, %v1190_v26  ;;  %v1246_v0 = vpop.permute.xlu0 %1245  ;;  %v1087_v29 = vcombine.low %v1083_v49, %v1083_v49 }
 0x370   :  { %v1134_v37 = vrot.slane %v1132_v33, 4  ;;  %908 = vrot.lane.b32.xlu1 %v897_v23, %s1676_s27  ;;  %848 = vrot.lane.b32.xlu0 %v839_v35, %s1678_s29  ;;  %v1199_v62 = vmul.f32 %v1195_v60, %v2077_v10  ;;  %v1249_v1 = vrot.slane %v1246_v0, 4 }
 0x371   :  { %v1144_v61 = vcombine.high %v1140_v4, %v1140_v4 }
 0x372   :  { %v1136_v2 = vsel %vm88_vm6, %v1133_v36, %v1134_v37  ;;  %v1203_v8 = vcombine.low %v1199_v62, %v1199_v62  ;;  %v1251_v11 = vsel %vm109_vm13, %v1249_v1, %v1246_v0 }
 0x373   :  { %v1137_v3 = vsel %vm233_vm9, %v1136_v2, %v1132_v33  ;;  %v1248_v7 = vpop.permute.xlu1 %1247  ;;  %v1256_v14 = vmul.f32 %v1251_v11, %v2075_v6 }
 0x374   :  { %1024 = vrot.lane.b32.xlu1 %v1013_v39, %s1675_s26  ;;  %964 = vrot.lane.b32.xlu0 %v955_v40, %s1677_s28  ;;  %v1141_v44 = vmul.f32 %v1137_v3, %v2077_v10  ;;  %v1250_v16 = vrot.slane %v1248_v7, 4 }
 0x375   :  { %v1260_v12 = vcombine.high %v1256_v14, %v1256_v14 }
 0x376   :  { %v1252_v13 = vsel %vm88_vm6, %v1249_v1, %v1250_v16  ;;  %v1145_v17 = vcombine.high %v1141_v44, %v1141_v44 }
 0x377   :  { %v1253_v15 = vsel %vm109_vm13, %v1252_v13, %v1248_v7 }
 0x378   :  { %1150 = vrot.lane.b32.xlu1 %v1141_v44, %s1673_s24  ;;  %1090 = vrot.lane.b32.xlu0 %v1082_v45, %s1674_s25  ;;  %v1257_v18 = vmul.f32 %v1253_v15, %v2077_v10 }
 0x37a   :  { %v1261_v19 = vcombine.high %v1257_v18, %v1257_v18 }
 0x37c   :  { %1146 = vrot.lane.b32.xlu1 %v1140_v4, %s1673_s24  ;;  %1206 = vrot.lane.b32.xlu0 %v1198_v5, %s1671_s22 }
 0x380   :  { %1094 = vrot.lane.b32.xlu1 %v1083_v49, %s1674_s25  ;;  %902 = vrot.lane.b32.xlu0 %v900_v50, %s1676_s27 }
 0x384   :  { %846 = vrot.lane.b32.xlu1 %v842_v51, %s1678_s29  ;;  %1018 = vrot.lane.b32.xlu0 %v1016_v52, %s1675_s26 }
 0x388   :  { %962 = vrot.lane.b32.xlu1 %v958_v53, %s1677_s28  ;;  %906 = vrot.lane.b32.xlu0 %v901_v54, %s1676_s27 }
 0x38c   :  { %850 = vrot.lane.b32.xlu1 %v843_v56, %s1678_s29  ;;  %1022 = vrot.lane.b32.xlu0 %v1017_v57, %s1675_s26 }
 0x390   :  { %966 = vrot.lane.b32.xlu1 %v959_v59, %s1677_s28  ;;  %1148 = vrot.lane.b32.xlu0 %v1144_v61, %s1673_s24 }
 0x394   :  { %1092 = vrot.lane.b32.xlu1 %v1087_v29, %s1674_s25  ;;  %1088 = vrot.lane.b32.xlu0 %v1086_v63, %s1674_s25 }
 0x398   :  { %1208 = vrot.lane.b32.xlu1 %v1203_v8, %s1671_s22  ;;  %1204 = vrot.lane.b32.xlu0 %v1202_v9, %s1671_s22 }
 0x39c   :  { %1210 = vrot.lane.b32.xlu1 %v1199_v62, %s1671_s22  ;;  %1152 = vrot.lane.b32.xlu0 %v1145_v17, %s1673_s24 }
 0x3a0   :  { %1266 = vrot.lane.b32.xlu1 %v1257_v18, %s1672_s23  ;;  %1264 = vrot.lane.b32.xlu0 %v1260_v12, %s1672_s23 }
 0x3a4   :  { %1268 = vrot.lane.b32.xlu1 %v1261_v19, %s1672_s23  ;;  %1262 = vrot.lane.b32.xlu0 %v1256_v14, %s1672_s23 }
 0x3da   :  { %v905_v6 = vpop.permute.xlu1 %904  ;;  %v845_v21 = vpop.permute.xlu0 %844 }
 0x3db   :  { %859 = vst.msk [vmem:[#allocation2] sm:$0xf] %vm117_vm7, %v845_v21 }
 0x3de   :  { %v1021_v20 = vpop.permute.xlu1 %1020  ;;  %v961_v24 = vpop.permute.xlu0 %960 }
 0x3df   :  { %975 = vst.msk [vmem:[#allocation2 + $0x20] sm:$0xf] %vm241_vm10, %v961_v24 }
 0x3e2   :  { %v909_v25 = vpop.permute.xlu1 %908  ;;  %v849_v10 = vpop.permute.xlu0 %848 }
 0x3e6   :  { %v1025_v26 = vpop.permute.xlu1 %1024  ;;  %v965_v27 = vpop.permute.xlu0 %964 }
 0x3ea   :  { %v2158_v28 = vpop.permute.xlu1 %1150  ;;  %v1091_v30 = vpop.permute.xlu0 %1090 }
 0x3ee   :  { %v1147_v31 = vpop.permute.xlu1 %1146  ;;  %v2160_v23 = vpop.permute.xlu0 %1206 }
 0x3f2   :  { %v1095_v32 = vpop.permute.xlu1 %1094  ;;  %v903_v33 = vpop.permute.xlu0 %902 }
 0x3f3   :  { %1106 = vst.msk [vmem:[#allocation2 + $0x58] sm:$0xf0] %vm378_vm11, %v1095_v32  ;;  %v910_v35 = vsel %vm171_vm8, %v903_v33, %v905_v6 }
 0x3f4   :  { %917 = vst.msk [vmem:[#allocation2] sm:$0xf0] %vm179_vm12, %v903_v33  ;;  %918 = vst [vmem:[#allocation2 + $0x8] sm:$0xf0] %v910_v35 }
 0x3f6   :  { %v847_v34 = vpop.permute.xlu1 %846  ;;  %v1019_v36 = vpop.permute.xlu0 %1018 }
 0x3f7   :  { %v852_v37 = vsel %vm109_vm13, %v845_v21, %v847_v34  ;;  %v853_v38 = vsel %vm109_vm13, %v847_v34, %v849_v10  ;;  %v1026_v39 = vsel %vm295_vm5, %v1019_v36, %v1021_v20  ;;  %1033 = vst.msk [vmem:[#allocation2 + $0x20] sm:$0xf0] %vm303_vm14, %v1019_v36 }
 0x3f8   :  { %860 = vst [vmem:[#allocation2 + $0x8] sm:$0xf] %v852_v37  ;;  %861 = vst [vmem:[#allocation2 + $0x10] sm:$0xf] %v853_v38 }
 0x3f9   :  { %1034 = vst [vmem:[#allocation2 + $0x28] sm:$0xf0] %v1026_v39  ;;  %v1281_v39 = vld [vmem:[%s2242_s5] sm:$0xf] }
 0x3fa   :  { %v963_v2 = vpop.permute.xlu1 %962  ;;  %v907_v3 = vpop.permute.xlu0 %906 }
 0x3fb   :  { %v968_v40 = vsel %vm233_vm9, %v961_v24, %v963_v2  ;;  %v969_v41 = vsel %vm233_vm9, %v963_v2, %v965_v27  ;;  %v911_v42 = vsel %vm171_vm8, %v905_v6, %v907_v3  ;;  %v912_v43 = vsel %vm171_vm8, %v907_v3, %v909_v25  ;;  %v1282_v55 = vld [vmem:[#allocation2] sm:$0xff] }
 0x3fc   :  { %976 = vst [vmem:[#allocation2 + $0x28] sm:$0xf] %v968_v40  ;;  %977 = vst [vmem:[#allocation2 + $0x30] sm:$0xf] %v969_v41 }
 0x3fd   :  { %919 = vst [vmem:[#allocation2 + $0x10] sm:$0xf0] %v911_v42  ;;  %920 = vst [vmem:[#allocation2 + $0x18] sm:$0xf0] %v912_v43 }
 0x3fe   :  { %v851_v44 = vpop.permute.xlu1 %850  ;;  %v1023_v45 = vpop.permute.xlu0 %1022  ;;  %v1286_v5 = vld [vmem:[#allocation2 + $0x20] sm:$0xff] }
 0x3ff   :  { %v854_v46 = vsel %vm109_vm13, %v849_v10, %v851_v44  ;;  %v1027_v22 = vsel %vm295_vm5, %v1021_v20, %v1023_v45  ;;  %v1028_v47 = vsel %vm295_vm5, %v1023_v45, %v1025_v26  ;;  %v1283_v50 = vld [vmem:[#allocation2 + $0x8] sm:$0xff]  ;;  %v1584_v56 = vpack.c.bf16 %v1286_v5, %v1282_v55 }
 0x400   :  { %862 = vst [vmem:[#allocation2 + $0x18] sm:$0xf] %v854_v46  ;;  %1035 = vst [vmem:[#allocation2 + $0x30] sm:$0xf0] %v1027_v22  ;;  %vm2249_vm5 = vcmask 920576  }
 0x401   :  { %1036 = vst [vmem:[#allocation2 + $0x38] sm:$0xf0] %v1028_v47 }
 0x402   :  { %v967_v4 = vpop.permute.xlu1 %966  ;;  %v1149_v48 = vpop.permute.xlu0 %1148 }
 0x403   :  { %v970_v49 = vsel %vm233_vm9, %v965_v27, %v967_v4  ;;  %v1287_v51 = vld [vmem:[#allocation2 + $0x28] sm:$0xff]  ;;  %v1154_v52 = vsel %vm214_vm2, %v1147_v31, %v1149_v48  ;;  %v1155_v53 = vsel %vm214_vm2, %v1149_v48, %v2158_v28 }
 0x404   :  { %978 = vst [vmem:[#allocation2 + $0x38] sm:$0xf] %v970_v49  ;;  %v1582_v54 = vpack.c.bf16 %v1287_v51, %v1283_v50  ;;  %1161 = vst [vmem:[#allocation2 + $0x60] sm:$0xf] %v1154_v52  ;;  %v1284_v9 = vld [vmem:[#allocation2 + $0x10] sm:$0xff] }
 0x405   :  { %1162 = vst [vmem:[#allocation2 + $0x68] sm:$0xf] %v1155_v53 }
 0x406   :  { %1583 = vmatprep.subr.bf16.mxu0 %v1582_v54  ;;  %v1093_v57 = vpop.permute.xlu1 %1092  ;;  %v1089_v58 = vpop.permute.xlu0 %1088 }
 0x407   :  { %v1097_v59 = vsel %vm276_vm3, %v1091_v30, %v1093_v57  ;;  %v1098_v60 = vsel %vm276_vm3, %v1093_v57, %v1095_v32  ;;  %1585 = vmatpush1.bf16.msra.mxu0 %v1584_v56  ;;  %v1096_v61 = vsel %vm276_vm3, %v1089_v58, %v1091_v30  ;;  %v1288_v7 = vld [vmem:[#allocation2 + $0x30] sm:$0xff]  ;;  %v1285_v63 = vld [vmem:[#allocation2 + $0x18] sm:$0xff]  ;;  %vm2248_vm3 = vcmask 916484  }
 0x408   :  { %1104 = vst [vmem:[#allocation2 + $0x48] sm:$0xf0] %v1097_v59  ;;  %1105 = vst [vmem:[#allocation2 + $0x50] sm:$0xf0] %v1098_v60  ;;  %v1592_v11 = vpack.c.bf16 %v1288_v7, %v1284_v9  ;;  %v1293_v30 = vld [vmem:[#allocation2 + $0x58] sm:$0xff] }
 0x409   :  { %1103 = vst [vmem:[#allocation2 + $0x40] sm:$0xf0] %v1096_v61 }
 0x40a   :  { %v1209_v0 = vpop.permute.xlu1 %1208  ;;  %v1205_v62 = vpop.permute.xlu0 %1204 }
 0x40b   :  { %v1213_v29 = vsel %vm152_vm1, %v2160_v23, %v1209_v0  ;;  %v1289_v1 = vld [vmem:[#allocation2 + $0x38] sm:$0xff]  ;;  %v1212_v16 = vsel %vm152_vm1, %v1205_v62, %v2160_v23 }
 0x40c   :  { %1220 = vst [vmem:[#allocation2 + $0x68] sm:$0xf0] %v1213_v29  ;;  %v1590_v8 = vpack.c.bf16 %v1289_v1, %v1285_v63  ;;  %1219 = vst [vmem:[#allocation2 + $0x60] sm:$0xf0] %v1212_v16  ;;  %v1486_v63 = vld [vmem:[%s2243_s6] sm:$0xf] }
 0x40d   :  { %s1681_s6 = smov [#allocation7]  }
 0x40e   :  { %1591 = vmatprep.subr.bf16.mxu1 %v1590_v8  ;;  %v1211_v13 = vpop.permute.xlu1 %1210  ;;  %v1153_v14 = vpop.permute.xlu0 %1152  ;;  %v1490_v8 = vld [vmem:[%s2244_s7] sm:$0xf]  ;;  %s1543_s7 = sshll.u32 %s1681_s6, 4  ;;  %s1544_s7 = int_to_ptr.vmem [resolvable:$true] %s1543_s7 }
 0x40f   :  { %v1214_v15 = vsel %vm152_vm1, %v1209_v0, %v1211_v13  ;;  %1222 = vst.msk [vmem:[#allocation2 + $0x78] sm:$0xf0] %vm2248_vm3, %v1211_v13  ;;  %1593 = vmatpush1.bf16.msra.mxu1 %v1592_v11  ;;  %v1156_v17 = vsel %vm214_vm2, %v2158_v28, %v1153_v14  ;;  %v1291_v19 = vld [vmem:[#allocation2 + $0x48] sm:$0xff]  ;;  %v1292_v33 = vld [vmem:[#allocation2 + $0x50] sm:$0xff]  ;;  %v1493_v13 = vld [vmem:[%s2237_s0] sm:$0xff]  ;;  %p1647_p9 = scmp.lt.s32.totalorder %s1544_s7, %s1544_s7 }
 0x410   :  { %1164 = vst.msk [vmem:[#allocation2 + $0x78] sm:$0xf] %vm2249_vm5, %v1153_v14  ;;  %1221 = vst [vmem:[#allocation2 + $0x70] sm:$0xf0] %v1214_v15  ;;  %v1290_v24 = vld [vmem:[#allocation2 + $0x40] sm:$0xff]  ;;  %v1494_v14 = vld [vmem:[%s2237_s0 + $0x8] sm:$0xff] }
 0x411   :  { %1163 = vst [vmem:[#allocation2 + $0x70] sm:$0xf] %v1156_v17  ;;  %v1515_v17 = vcombine.high %v1493_v13, %v1493_v13  ;;  %s1642_s0 = scalar_lea.vmem %s1544_s7, 256 }
 0x412   :  { %v1267_v18 = vpop.permute.xlu1 %1266  ;;  %v1265_v12 = vpop.permute.xlu0 %1264  ;;  %p1643_p8 = scmp.ne.s32.totalorder %s1544_s7, %s1642_s0  ;;  %p1648_p10 = scmp.lt.s32.totalorder %s1642_s0, %s1642_s0 }
 0x413   :  { %v1295_v6 = vld [vmem:[#allocation2 + $0x68] sm:$0xff]  ;;  %v1271_v21 = vsel %vm90_vm0, %v1265_v12, %v1267_v18  ;;  %v1294_v25 = vld [vmem:[#allocation2 + $0x60] sm:$0xff] }
 0x414   :  { %v1586_v20 = vpack.c.bf16 %v1295_v6, %v1291_v19  ;;  %1278 = vst [vmem:[#allocation2 + $0x88] sm:$0xf] %v1271_v21  ;;  %v1588_v10 = vpack.c.bf16 %v1294_v25, %v1290_v24  ;;  %p1649_p11 = por %p1648_p10, %p1647_p9 }
 0x416   :  { %1587 = vmatprep.subr.bf16.mxu0 %v1586_v20  ;;  %v1269_v26 = vpop.permute.xlu1 %1268  ;;  %v1263_v27 = vpop.permute.xlu0 %1262  ;;  %p1650_p12 = pnand %p1649_p11, %p1643_p8 }
 0x417   :  { %v1272_v28 = vsel %vm90_vm0, %v1267_v18, %v1269_v26  ;;  %1280 = vst.msk [vmem:[#allocation2 + $0x98] sm:$0xf] %vm558_vm15, %v1269_v26  ;;  %1589 = vmatpush1.bf16.msra.mxu0 %v1588_v10  ;;  %v1297_v31 = vld [vmem:[#allocation2 + $0x78] sm:$0xff]  ;;  %v1270_v23 = vsel %vm90_vm0, %v1263_v27, %v1265_v12  ;;  %v1516_v18 = vcombine.high %v1494_v14, %v1494_v14 }
 0x418   :  { %1279 = vst [vmem:[#allocation2 + $0x90] sm:$0xf] %v1272_v28  ;;  %v1594_v32 = vpack.c.bf16 %v1297_v31, %v1293_v30  ;;  %v1296_v35 = vld [vmem:[#allocation2 + $0x70] sm:$0xff]  ;;  %1277 = vst [vmem:[#allocation2 + $0x80] sm:$0xf] %v1270_v23 }
 0x419   :  { %v1596_v34 = vpack.c.bf16 %v1296_v35, %v1292_v33 }
 0x41a   :  { %1595 = vmatprep.subr.bf16.mxu1 %v1594_v32 }
 0x41b   :  { %1597 = vmatpush1.bf16.msra.mxu1 %v1596_v34  ;;  %v1299_v36 = vld [vmem:[#allocation2 + $0x88] sm:$0xf] }
 0x41c   :  { %1558 = vmatprep.subr.msk.mxu0 %vm88_vm6, %v1299_v36 }
 0x41e   :  { %v1301_v37 = vld [vmem:[#allocation2 + $0x98] sm:$0xf] }
 0x41f   :  { %1561 = vmatprep.subr.msk.mxu1 %vm88_vm6, %v1301_v37  ;;  %v1300_v38 = vld [vmem:[#allocation2 + $0x90] sm:$0xf]  ;;  %v1298_v2 = vld [vmem:[#allocation2 + $0x80] sm:$0xf] }
 0x420   :  { %1562 = vmatpush1.msk.msra.mxu1 %vm88_vm6, %v1300_v38  ;;  %1559 = vmatpush1.msk.msra.mxu0 %vm88_vm6, %v1298_v2 }
 0x421   :  { %1563 = vmatmul.mubr.msk.f32.vlgmr.msra.gmra.mrb[2].mxu1 %vm581_vm4, %v1281_v39  ;;  %1560 = vmatmul.mubr.msk.f32.vlgmr.msra.gmra.mrb[2].mxu0 %vm581_vm4, %v1281_v39 }
 0x4f4   :  { %v1454_v3 = vpop.f32.mrb[2].mxu1  ;;  %v1383_v40 = vpop.f32.mrb[2].mxu0 }
 0x4f5   :  { %v1471_v41 = vmul.f32 %v1454_v3, %v1454_v3  ;;  %v1456_v42 = vpop.f32.mrb[3].mxu1  ;;  %v1459_v43 = vsel %vm88_vm6, %v1383_v40, 0.0  ;;  %v1469_v44 = vmul.f32 %v1383_v40, %v1383_v40  ;;  %v1385_v45 = vpop.f32.mrb[3].mxu0  ;;  %v1462_v47 = vsel %vm88_vm6, %v1454_v3, 0.0 }
 0x4f6   :  { %v1460_v46 = vsel %vm88_vm6, %v1385_v45, 0.0  ;;  %v1470_v22 = vmul.f32 %v1385_v45, %v1385_v45  ;;  %v1472_v50 = vmul.f32 %v1456_v42, %v1456_v42  ;;  %v1464_v53 = vsel %vm88_vm6, %v1456_v42, 0.0 }
 0x4f7   :  { %v1473_v4 = vsel %vm88_vm6, %v1469_v44, 0.0  ;;  %v1461_v5 = vadd.f32 %v1460_v46, %v1459_v43  ;;  %v1476_v49 = vsel %vm88_vm6, %v1471_v41, 0.0 }
 0x4f8   :  { %v1474_v48 = vsel %vm88_vm6, %v1470_v22, 0.0  ;;  %v1478_v56 = vsel %vm88_vm6, %v1472_v50, 0.0 }
 0x4f9   :  { %v1475_v51 = vadd.f32 %v1474_v48, %v1473_v4  ;;  %v1463_v52 = vadd.f32 %v1462_v47, %v1461_v5 }
 0x4fb   :  { %v1465_v54 = vadd.f32 %v1464_v53, %v1463_v52  ;;  %v1477_v55 = vadd.f32 %v1476_v49, %v1475_v51 }
 0x4fd   :  { %1466 = vadd.xlane.f32.xlu0 %v1465_v54  ;;  %v1479_v57 = vadd.f32 %v1478_v56, %v1477_v55 }
 0x4ff   :  { %1480 = vadd.xlane.f32.xlu1 %v1479_v57 }
 0x58a   :  { %v1467_v58 = vpop.xlane.xlu0 %1466 }
 0x58b   :  { %v1468_v59 = vmul.f32 0.001953125, %v1467_v58 }
 0x58c   :  { %v1481_v60 = vpop.xlane.xlu1 %1480 }
 0x58d   :  { %v1483_v61 = vmul.f32 %v1468_v59, %v1468_v59  ;;  %v1482_v0 = vmul.f32 0.001953125, %v1481_v60 }
 0x58f   :  { %v1484_v7 = vsub.f32 %v1482_v0, %v1483_v61 }
 0x591   :  { %v1485_v62 = vmax.f32 %v1484_v7, 0.0 }
 0x593   :  { %v1487_v29 = vadd.f32 1e-05, %v1485_v62 }
 0x595   :  { %1618 = vrsqrt.f32 %v1487_v29 }
 0x59f   :  { %v1619_v1 = vpop.eup %1618 }
 0x5a0   :  { %v1489_v16 = vmul.f32 %v1619_v1, %v1486_v63 }
 0x5a2   :  { %1497 = vperm.xlu0 %1612, %v1489_v16   ;;  %v1491_v9 = vmul.f32 %v1489_v16, %v1468_v59 }
 0x5a4   :  { %v1492_v11 = vsub.f32 %v1490_v8, %v1491_v9 }
 0x5a6   :  { %1506 = vperm.xlu1 %1613, %v1492_v11  }
 0x621   :  { %v1498_v15 = vpop.permute.xlu0 %1497 }
 0x622   :  { %v1500_v12 = vmul.f32 %v1498_v15, %v1383_v40  ;;  %v1501_v19 = vmul.f32 %v1498_v15, %v1385_v45  ;;  %v1502_v6 = vmul.f32 %v1498_v15, %v1454_v3  ;;  %v1503_v21 = vmul.f32 %v1498_v15, %v1456_v42 }
 0x625   :  { %v1507_v20 = vpop.permute.xlu1 %1506 }
 0x626   :  { %v1509_v24 = vadd.f32 %v1507_v20, %v1500_v12  ;;  %v1510_v25 = vadd.f32 %v1507_v20, %v1501_v19  ;;  %v1511_v10 = vadd.f32 %v1507_v20, %v1502_v6  ;;  %v1512_v26 = vadd.f32 %v1507_v20, %v1503_v21 }
 0x628   :  { %v1519_v27 = vadd.f32 %v1509_v24, %v1493_v13  ;;  %v1520_v28 = vadd.f32 %v1515_v17, %v1510_v25  ;;  %v1521_v30 = vadd.f32 %v1511_v10, %v1494_v14  ;;  %v1522_v31 = vadd.f32 %v1516_v18, %v1512_v26 }
 0x62a   :  { %v1523_v23 = vmax.f32 %v1519_v27, 0.0  ;;  %v1524_v32 = vmax.f32 %v1520_v28, 0.0  ;;  %v1525_v33 = vmax.f32 %v1521_v30, 0.0  ;;  %v1526_v35 = vmax.f32 %v1522_v31, 0.0 }
 0x62c   :  { %v1531_v34 = vcombine.low %v1523_v23, %v1524_v32  ;;  %v1532_v36 = vcombine.low %v1525_v33, %v1526_v35 }
 0x62e   :  { %1535 = vst [vmem:[#allocation7] sm:$0xff] %v1531_v34  ;;  %1536 = vst [vmem:[#allocation7 + $0x8] sm:$0xff] %v1532_v36 }
 0x62f   :  { %1653 = shalt.err (!%p1650_p12)
}
 0x630   :  { %s1654_s21 = scalar_lea.hbm %s2245_s8, 256 }
 0x631   :  { %p1655_p13 = scmp.ne.s32.totalorder %s2245_s8, %s1654_s21  ;;  %p1658_p0 = scmp.lt.u32.totalorder %s1654_s21, %s2245_s8 }
 0x633   :  { %p1660_p1 = pnand %p1658_p0, %p1655_p13 }
 0x635   :  { %1663 = shalt.err (!%p1660_p1)
}
 0x636   :  { %1546 = dma.vmem_to_hbm [thread:$0]  %s1544_s7, 256, %s2245_s8, [#allocation6]  }
 0x637   :  { %1666 = dma.done.wait [#allocation6], 256  }
 0x638   :  { %1667 = vsyncadd [#allocation6], 4294967040 }
 0x639   :  { %1550 = vsyncpa [#allocation5], 1 }
 0x63a   :  { %1551 = vsyncpa [#allocation6], 1 }

</bundles_post_ra>
